<compile_context>
chip_gen: v7x
topology: tpu7x:2x2x1
jax: 0.10.0
libtpu: 0.0.40
codegen_flags: <defaults>
</compile_context>

<pallas_src>
import numpy as np
import jax
import jax.numpy as jnp
from jax.experimental import pallas as pl
from jax.experimental.pallas import tpu as pltpu

IN_SIZE = 1
HIDDEN = 32
NUM_LAYERS = 2
OUT_SIZE = 1


def lstm_model_kernel(xs_ref, w1_ref, b1_ref, wih0_ref, whh0_ref, bg0_ref,
                      wih1_ref, whh1_ref, bg1_ref, w2a_ref, w2b_ref, b2_ref,
                      o_ref):
    H = HIDDEN
    B = o_ref.shape[0]
    TB = xs_ref.shape[0]
    T = TB // B

    # ---- hoisted batched pre-compute (off the recurrent critical path) -------------
    # linear_1 + ReLU over all timesteps at once (IN_SIZE == 1 -> broadcasted scale),
    # then the layer-0 input projection (+ fused, pre-scaled bias) in one MXU pass.
    # (T*B, 4H) = (16, 128) f32 = 2 vregs, kept as a traced value (no VMEM round trip).
    inp_all = jnp.maximum(xs_ref[...] * w1_ref[...] + b1_ref[...], 0.0)     # (T*B, H)
    ih0_all = jnp.dot(inp_all, wih0_ref[...],
                      preferred_element_type=jnp.float32) + bg0_ref[...]    # (T*B, 4H)

    # ---- loop-invariant weight loads / bias broadcast, hoisted ---------------------
    whh0 = whh0_ref[...]                                   # (H, 4H)
    wih1 = wih1_ref[...]                                   # (H, 4H)
    whh1 = whh1_ref[...]                                   # (H, 4H)
    bg1 = jnp.broadcast_to(bg1_ref[...], (B, 4 * H))       # broadcast once, not per step

    def cell(gates, c):
        # gates: (B, 4H), lane blocks [i | f | g | o].  The i/f/o weight columns and
        # biases were pre-scaled by 0.5 in prepare_params(), so a single full-vreg
        # tanh (EUP) gives sigmoid for i/f/o via 0.5*t + 0.5 (exact identity) and
        # tanh for the g block -> 2 EUP ops per cell including tanh(c_new).
        t_all = jnp.tanh(gates)
        s_all = 0.5 * t_all + 0.5
        i_s = s_all[:, 0:H]              # prefix slice: free
        f_s = s_all[:, H:2 * H]          # lane-rotating slices (XLU), off the EUP path
        g_t = t_all[:, 2 * H:3 * H]
        o_s = s_all[:, 3 * H:4 * H]
        c_new = f_s * c + i_s * g_t
        h_new = o_s * jnp.tanh(c_new)
        return h_new, c_new

    # Zero initial hidden / cell state (PyTorch default when no (h0, c0) is given).
    h0 = jnp.zeros((B, H), jnp.float32)
    c0 = jnp.zeros((B, H), jnp.float32)
    h1 = jnp.zeros((B, H), jnp.float32)
    c1 = jnp.zeros((B, H), jnp.float32)

    # Fully unrolled recurrence; all slice indices are python constants.
    for t in range(T):
        # layer 0: input projection precomputed; only h0 @ W_hh is on the serial path.
        g0 = ih0_all[t * B:(t + 1) * B, :] + jnp.dot(
            h0, whh0, preferred_element_type=jnp.float32)
        h0, c0 = cell(g0, c0)
        # layer 1: two K=H dots (no lane concat); the h1 term depends only on the
        # previous step, so it can overlap with this step's layer-0 cell math.
        g1 = (jnp.dot(h0, wih1, preferred_element_type=jnp.float32)
              + jnp.dot(h1, whh1, preferred_element_type=jnp.float32)
              + bg1)
        h1, c1 = cell(g1, c1)

    # h_n.permute(1, 0, 2).reshape(B, L*H) -> dropout (identity, eval) -> linear_2,
    # with linear_2's weight split per layer so no lane concat is needed.
    o_ref[...] = (jnp.dot(h0, w2a_ref[...], preferred_element_type=jnp.float32)
                  + jnp.dot(h1, w2b_ref[...], preferred_element_type=jnp.float32)
                  + b2_ref[...])                            # (B, OUT)


def prepare_params(params):
    """One-time packing of module-layout params into the kernel layout.

    Input convention ("x @ W", PyTorch gate order i, f, g, o):
      w1 (IN,H)=linear_1.weight.T, b1 (1,H)
      wih/whh (L,H,4H)=lstm.weight_*_l{0,1}.T, bg (L,1,4H)=b_ih+b_hh
      w2 (2H,OUT)=linear_2.weight.T, b2 (1,OUT)
    The i/f/o gate columns & bias entries are pre-scaled by 0.5 so the kernel can use
    one tanh per gate vector (sigmoid(x) == 0.5*tanh(x/2) + 0.5, exact).
    """
    w1, b1, wih, whh, bg, w2, b2 = params
    H = HIDDEN
    scale = jnp.concatenate([jnp.full((H,), 0.5), jnp.full((H,), 0.5),
                             jnp.ones((H,)), jnp.full((H,), 0.5)]).astype(jnp.float32)
    wih0, whh0, bg0 = wih[0] * scale, whh[0] * scale, bg[0] * scale
    wih1, whh1, bg1 = wih[1] * scale, whh[1] * scale, bg[1] * scale
    w2a, w2b = w2[:H], w2[H:]                    # layer-0 / layer-1 halves of linear_2
    return (w1, b1, wih0, whh0, bg0, wih1, whh1, bg1, w2a, w2b, b2)


@jax.jit
def lstm_model_forward(x, packed):
    """x: (B, T, IN) float32 -> (B,) float32 (matches predictions[:, -1])."""
    B, T, in_size = x.shape
    assert in_size == IN_SIZE == 1, "linear_1 is applied as a broadcasted scale"
    w1, b1, wih0, whh0, bg0, wih1, whh1, bg1, w2a, w2b, b2 = packed

    # Time-major, flattened: row t*B + b == (timestep t, batch b).  Under jit this
    # fuses with the surrounding dispatch of the pallas_call.
    xs2d = jnp.transpose(x, (1, 0, 2)).reshape(T * B, IN_SIZE)

    def full(shape):
        n = len(shape)
        return pl.BlockSpec(shape, lambda i: (0,) * n)

    args = (xs2d, w1, b1, wih0, whh0, bg0, wih1, whh1, bg1, w2a, w2b, b2)
    # TODO(synk): once B grows (>=16-ish), add a leading "parallel" grid axis over
    # batch tiles; at B=2/T=8 a single block / single core is the right structure.
    out = pl.pallas_call(
        lstm_model_kernel,
        grid=(1,),
        in_specs=[full(a.shape) for a in args],
        out_specs=pl.BlockSpec((B, OUT_SIZE), lambda i: (0, 0)),
        out_shape=jax.ShapeDtypeStruct((B, OUT_SIZE), jnp.float32),
        compiler_params=pltpu.CompilerParams(dimension_semantics=("arbitrary",)),
    )(*args)

    # predictions[:, -1] — with output_size == 1 this picks the only column.
    return out[:, -1]


def reference_forward(x, params):
    """Pure-JAX (PyTorch-parity) reference of LSTMModel.forward in eval mode."""
    w1, b1, wih, whh, bg, w2, b2 = params
    B, T, _ = x.shape
    H = HIDDEN
    inp = jax.nn.relu(jnp.einsum('bti,ih->bth', x, w1) + b1)       # linear_1 + ReLU
    h = [jnp.zeros((B, H), jnp.float32) for _ in range(NUM_LAYERS)]
    c = [jnp.zeros((B, H), jnp.float32) for _ in range(NUM_LAYERS)]
    for t in range(T):
        layer_in = inp[:, t, :]
        for l in range(NUM_LAYERS):
            g = layer_in @ wih[l] + h[l] @ whh[l] + bg[l]
            gi, gf, gg, go = jnp.split(g, 4, axis=-1)
            gi, gf, go = jax.nn.sigmoid(gi), jax.nn.sigmoid(gf), jax.nn.sigmoid(go)
            gg = jnp.tanh(gg)
            c[l] = gf * c[l] + gi * gg
            h[l] = go * jnp.tanh(c[l])
            layer_in = h[l]
    hcat = jnp.concatenate(h, axis=-1)        # h_n.permute(1,0,2).reshape(B, L*H)
    pred = hcat @ w2 + b2                     # dropout is identity in eval mode
    return pred[:, -1]


def init_params(key):
    """Deterministic synthetic parameters with the shapes implied by __init__."""
    H = HIDDEN
    ks = jax.random.split(key, 10)

    def u(k, shape, bound):
        return jax.random.uniform(k, shape, jnp.float32, -bound, bound)

    s1 = 1.0 / (IN_SIZE ** 0.5)
    w1 = u(ks[0], (IN_SIZE, H), s1)                    # linear_1.weight.T
    b1 = u(ks[1], (1, H), s1)

    sh = 1.0 / (H ** 0.5)
    wih = jnp.stack([u(ks[2], (H, 4 * H), sh),
                     u(ks[3], (H, 4 * H), sh)])        # (L, H, 4H)
    whh = jnp.stack([u(ks[4], (H, 4 * H), sh),
                     u(ks[5], (H, 4 * H), sh)])        # (L, H, 4H)
    bg = jnp.stack([u(ks[6], (1, 4 * H), 2 * sh),
                    u(ks[7], (1, 4 * H), 2 * sh)])     # (L, 1, 4H) = b_ih + b_hh

    s2 = 1.0 / ((NUM_LAYERS * H) ** 0.5)
    w2 = u(ks[8], (NUM_LAYERS * H, OUT_SIZE), s2)      # linear_2.weight.T
    b2 = u(ks[9], (1, OUT_SIZE), s2)
    return (w1, b1, wih, whh, bg, w2, b2)


if __name__ == "__main__":
    key = jax.random.PRNGKey(0)
    pkey, xkey = jax.random.split(key)
    params = init_params(pkey)
    packed = prepare_params(params)          # one-time derived-weight packing

    B, T = 2, 8
    x = jax.random.normal(xkey, (B, T, IN_SIZE), jnp.float32)

    out = lstm_model_forward(x, packed)
    jax.block_until_ready(out)
    assert out.shape == (B,)

    # Numerical parity vs. the pure-JAX reference LSTM.  Tolerances allow for MXU
    # matmul pass rounding and the exact tanh-based sigmoid reformulation; structural
    # errors (gate scrambling, wrong layout) would be orders of magnitude larger.
    ref = reference_forward(x, params)
    jax.block_until_ready(ref)
    np.testing.assert_allclose(np.asarray(out), np.asarray(ref), rtol=2e-2, atol=5e-3)

    print("KERNEL_OK")
</pallas_src>

<mosaic_0001>
module attributes {stable_mosaic.version = 11 : i64} {
  func.func @lstm_model_kernel(%arg0: i32, %arg1: memref<16x1xf32, #tpu.memory_space<vmem>>, %arg2: memref<1x32xf32, #tpu.memory_space<vmem>>, %arg3: memref<1x32xf32, #tpu.memory_space<vmem>>, %arg4: memref<32x128xf32, #tpu.memory_space<vmem>>, %arg5: memref<32x128xf32, #tpu.memory_space<vmem>>, %arg6: memref<1x128xf32, #tpu.memory_space<vmem>>, %arg7: memref<32x128xf32, #tpu.memory_space<vmem>>, %arg8: memref<32x128xf32, #tpu.memory_space<vmem>>, %arg9: memref<1x128xf32, #tpu.memory_space<vmem>>, %arg10: memref<32x1xf32, #tpu.memory_space<vmem>>, %arg11: memref<32x1xf32, #tpu.memory_space<vmem>>, %arg12: memref<1x1xf32, #tpu.memory_space<vmem>>, %arg13: memref<2x1xf32, #tpu.memory_space<vmem>>) attributes {dimension_semantics = [#tpu.dimension_semantics<arbitrary>], iteration_bounds = array<i64: 1>, scalar_prefetch = 0 : i64, scratch_operands = 0 : i64, tpu.core_type = #tpu.core_type<tc>, window_params = [{pipeline_mode = #tpu.pipeline_mode<synchronous>, transform_indices = @transform_0, window_bounds = array<i64: 16, 1>}, {pipeline_mode = #tpu.pipeline_mode<synchronous>, transform_indices = @transform_1, window_bounds = array<i64: 1, 32>}, {pipeline_mode = #tpu.pipeline_mode<synchronous>, transform_indices = @transform_2, window_bounds = array<i64: 1, 32>}, {pipeline_mode = #tpu.pipeline_mode<synchronous>, transform_indices = @transform_3, window_bounds = array<i64: 32, 128>}, {pipeline_mode = #tpu.pipeline_mode<synchronous>, transform_indices = @transform_4, window_bounds = array<i64: 32, 128>}, {pipeline_mode = #tpu.pipeline_mode<synchronous>, transform_indices = @transform_5, window_bounds = array<i64: 1, 128>}, {pipeline_mode = #tpu.pipeline_mode<synchronous>, transform_indices = @transform_6, window_bounds = array<i64: 32, 128>}, {pipeline_mode = #tpu.pipeline_mode<synchronous>, transform_indices = @transform_7, window_bounds = array<i64: 32, 128>}, {pipeline_mode = #tpu.pipeline_mode<synchronous>, transform_indices = @transform_8, window_bounds = array<i64: 1, 128>}, {pipeline_mode = #tpu.pipeline_mode<synchronous>, transform_indices = @transform_9, window_bounds = array<i64: 32, 1>}, {pipeline_mode = #tpu.pipeline_mode<synchronous>, transform_indices = @transform_10, window_bounds = array<i64: 32, 1>}, {pipeline_mode = #tpu.pipeline_mode<synchronous>, transform_indices = @transform_11, window_bounds = array<i64: 1, 1>}, {pipeline_mode = #tpu.pipeline_mode<synchronous>, transform_indices = @transform_12, window_bounds = array<i64: 2, 1>}]} {
    %c0 = arith.constant 0 : index
    %c0_0 = arith.constant 0 : index
    %0 = vector.load %arg1[%c0, %c0_0] : memref<16x1xf32, #tpu.memory_space<vmem>>, vector<16x1xf32>
    %c0_1 = arith.constant 0 : index
    %c0_2 = arith.constant 0 : index
    %1 = vector.load %arg2[%c0_1, %c0_2] : memref<1x32xf32, #tpu.memory_space<vmem>>, vector<1x32xf32>
    %2 = vector.broadcast %0 : vector<16x1xf32> to vector<16x32xf32>
    %3 = vector.broadcast %1 : vector<1x32xf32> to vector<16x32xf32>
    %4 = arith.mulf %2, %3 : vector<16x32xf32>
    %c0_3 = arith.constant 0 : index
    %c0_4 = arith.constant 0 : index
    %5 = vector.load %arg3[%c0_3, %c0_4] : memref<1x32xf32, #tpu.memory_space<vmem>>, vector<1x32xf32>
    %6 = vector.broadcast %5 : vector<1x32xf32> to vector<16x32xf32>
    %7 = arith.addf %4, %6 : vector<16x32xf32>
    %cst = arith.constant 0.000000e+00 : f32
    %8 = vector.broadcast %cst : f32 to vector<16x32xf32>
    %9 = arith.maximumf %7, %8 : vector<16x32xf32>
    %c0_5 = arith.constant 0 : index
    %c0_6 = arith.constant 0 : index
    %10 = vector.load %arg4[%c0_5, %c0_6] : memref<32x128xf32, #tpu.memory_space<vmem>>, vector<32x128xf32>
    %cst_7 = arith.constant dense<0.000000e+00> : vector<16x128xf32>
    %11 = tpu.matmul %9, %10, %cst_7 {dimension_numbers = #tpu.dot_dimension_numbers<[1], [0], [0], [1], [0, 0, 1, 1], [], []>} : vector<16x32xf32>, vector<32x128xf32>, vector<16x128xf32> -> vector<16x128xf32>
    %c0_8 = arith.constant 0 : index
    %c0_9 = arith.constant 0 : index
    %12 = vector.load %arg6[%c0_8, %c0_9] : memref<1x128xf32, #tpu.memory_space<vmem>>, vector<1x128xf32>
    %13 = vector.broadcast %12 : vector<1x128xf32> to vector<16x128xf32>
    %14 = arith.addf %11, %13 : vector<16x128xf32>
    %c0_10 = arith.constant 0 : index
    %c0_11 = arith.constant 0 : index
    %15 = vector.load %arg5[%c0_10, %c0_11] : memref<32x128xf32, #tpu.memory_space<vmem>>, vector<32x128xf32>
    %c0_12 = arith.constant 0 : index
    %c0_13 = arith.constant 0 : index
    %16 = vector.load %arg7[%c0_12, %c0_13] : memref<32x128xf32, #tpu.memory_space<vmem>>, vector<32x128xf32>
    %c0_14 = arith.constant 0 : index
    %c0_15 = arith.constant 0 : index
    %17 = vector.load %arg8[%c0_14, %c0_15] : memref<32x128xf32, #tpu.memory_space<vmem>>, vector<32x128xf32>
    %c0_16 = arith.constant 0 : index
    %c0_17 = arith.constant 0 : index
    %18 = vector.load %arg9[%c0_16, %c0_17] : memref<1x128xf32, #tpu.memory_space<vmem>>, vector<1x128xf32>
    %19 = vector.shape_cast %18 : vector<1x128xf32> to vector<1x128xf32>
    %20 = vector.broadcast %19 : vector<1x128xf32> to vector<2x128xf32>
    %cst_18 = arith.constant 0.000000e+00 : f32
    %21 = vector.broadcast %cst_18 : f32 to vector<2x32xf32>
    %cst_19 = arith.constant 0.000000e+00 : f32
    %22 = vector.broadcast %cst_19 : f32 to vector<2x32xf32>
    %cst_20 = arith.constant 0.000000e+00 : f32
    %23 = vector.broadcast %cst_20 : f32 to vector<2x32xf32>
    %cst_21 = arith.constant 0.000000e+00 : f32
    %24 = vector.broadcast %cst_21 : f32 to vector<2x32xf32>
    %25 = vector.extract_strided_slice %14 {offsets = [0, 0], sizes = [2, 128], strides = [1, 1]} : vector<16x128xf32> to vector<2x128xf32>
    %cst_22 = arith.constant dense<0.000000e+00> : vector<2x128xf32>
    %26 = tpu.matmul %21, %15, %cst_22 {dimension_numbers = #tpu.dot_dimension_numbers<[1], [0], [0], [1], [0, 0, 1, 1], [], []>} : vector<2x32xf32>, vector<32x128xf32>, vector<2x128xf32> -> vector<2x128xf32>
    %27 = arith.addf %25, %26 : vector<2x128xf32>
    %28 = math.tanh %27 : vector<2x128xf32>
    %cst_23 = arith.constant 5.000000e-01 : f32
    %29 = vector.broadcast %cst_23 : f32 to vector<2x128xf32>
    %30 = arith.mulf %29, %28 : vector<2x128xf32>
    %cst_24 = arith.constant 5.000000e-01 : f32
    %31 = vector.broadcast %cst_24 : f32 to vector<2x128xf32>
    %32 = arith.addf %30, %31 : vector<2x128xf32>
    %33 = vector.extract_strided_slice %32 {offsets = [0, 0], sizes = [2, 32], strides = [1, 1]} : vector<2x128xf32> to vector<2x32xf32>
    %34 = vector.extract_strided_slice %32 {offsets = [0, 32], sizes = [2, 32], strides = [1, 1]} : vector<2x128xf32> to vector<2x32xf32>
    %35 = vector.extract_strided_slice %28 {offsets = [0, 64], sizes = [2, 32], strides = [1, 1]} : vector<2x128xf32> to vector<2x32xf32>
    %36 = vector.extract_strided_slice %32 {offsets = [0, 96], sizes = [2, 32], strides = [1, 1]} : vector<2x128xf32> to vector<2x32xf32>
    %37 = arith.mulf %34, %22 : vector<2x32xf32>
    %38 = arith.mulf %33, %35 : vector<2x32xf32>
    %39 = arith.addf %37, %38 : vector<2x32xf32>
    %40 = math.tanh %39 : vector<2x32xf32>
    %41 = arith.mulf %36, %40 : vector<2x32xf32>
    %cst_25 = arith.constant dense<0.000000e+00> : vector<2x128xf32>
    %42 = tpu.matmul %41, %16, %cst_25 {dimension_numbers = #tpu.dot_dimension_numbers<[1], [0], [0], [1], [0, 0, 1, 1], [], []>} : vector<2x32xf32>, vector<32x128xf32>, vector<2x128xf32> -> vector<2x128xf32>
    %cst_26 = arith.constant dense<0.000000e+00> : vector<2x128xf32>
    %43 = tpu.matmul %23, %17, %cst_26 {dimension_numbers = #tpu.dot_dimension_numbers<[1], [0], [0], [1], [0, 0, 1, 1], [], []>} : vector<2x32xf32>, vector<32x128xf32>, vector<2x128xf32> -> vector<2x128xf32>
    %44 = arith.addf %42, %43 : vector<2x128xf32>
    %45 = arith.addf %44, %20 : vector<2x128xf32>
    %46 = math.tanh %45 : vector<2x128xf32>
    %cst_27 = arith.constant 5.000000e-01 : f32
    %47 = vector.broadcast %cst_27 : f32 to vector<2x128xf32>
    %48 = arith.mulf %47, %46 : vector<2x128xf32>
    %cst_28 = arith.constant 5.000000e-01 : f32
    %49 = vector.broadcast %cst_28 : f32 to vector<2x128xf32>
    %50 = arith.addf %48, %49 : vector<2x128xf32>
    %51 = vector.extract_strided_slice %50 {offsets = [0, 0], sizes = [2, 32], strides = [1, 1]} : vector<2x128xf32> to vector<2x32xf32>
    %52 = vector.extract_strided_slice %50 {offsets = [0, 32], sizes = [2, 32], strides = [1, 1]} : vector<2x128xf32> to vector<2x32xf32>
    %53 = vector.extract_strided_slice %46 {offsets = [0, 64], sizes = [2, 32], strides = [1, 1]} : vector<2x128xf32> to vector<2x32xf32>
    %54 = vector.extract_strided_slice %50 {offsets = [0, 96], sizes = [2, 32], strides = [1, 1]} : vector<2x128xf32> to vector<2x32xf32>
    %55 = arith.mulf %52, %24 : vector<2x32xf32>
    %56 = arith.mulf %51, %53 : vector<2x32xf32>
    %57 = arith.addf %55, %56 : vector<2x32xf32>
    %58 = math.tanh %57 : vector<2x32xf32>
    %59 = arith.mulf %54, %58 : vector<2x32xf32>
    %60 = vector.extract_strided_slice %14 {offsets = [2, 0], sizes = [2, 128], strides = [1, 1]} : vector<16x128xf32> to vector<2x128xf32>
    %cst_29 = arith.constant dense<0.000000e+00> : vector<2x128xf32>
    %61 = tpu.matmul %41, %15, %cst_29 {dimension_numbers = #tpu.dot_dimension_numbers<[1], [0], [0], [1], [0, 0, 1, 1], [], []>} : vector<2x32xf32>, vector<32x128xf32>, vector<2x128xf32> -> vector<2x128xf32>
    %62 = arith.addf %60, %61 : vector<2x128xf32>
    %63 = math.tanh %62 : vector<2x128xf32>
    %cst_30 = arith.constant 5.000000e-01 : f32
    %64 = vector.broadcast %cst_30 : f32 to vector<2x128xf32>
    %65 = arith.mulf %64, %63 : vector<2x128xf32>
    %cst_31 = arith.constant 5.000000e-01 : f32
    %66 = vector.broadcast %cst_31 : f32 to vector<2x128xf32>
    %67 = arith.addf %65, %66 : vector<2x128xf32>
    %68 = vector.extract_strided_slice %67 {offsets = [0, 0], sizes = [2, 32], strides = [1, 1]} : vector<2x128xf32> to vector<2x32xf32>
    %69 = vector.extract_strided_slice %67 {offsets = [0, 32], sizes = [2, 32], strides = [1, 1]} : vector<2x128xf32> to vector<2x32xf32>
    %70 = vector.extract_strided_slice %63 {offsets = [0, 64], sizes = [2, 32], strides = [1, 1]} : vector<2x128xf32> to vector<2x32xf32>
    %71 = vector.extract_strided_slice %67 {offsets = [0, 96], sizes = [2, 32], strides = [1, 1]} : vector<2x128xf32> to vector<2x32xf32>
    %72 = arith.mulf %69, %39 : vector<2x32xf32>
    %73 = arith.mulf %68, %70 : vector<2x32xf32>
    %74 = arith.addf %72, %73 : vector<2x32xf32>
    %75 = math.tanh %74 : vector<2x32xf32>
    %76 = arith.mulf %71, %75 : vector<2x32xf32>
    %cst_32 = arith.constant dense<0.000000e+00> : vector<2x128xf32>
    %77 = tpu.matmul %76, %16, %cst_32 {dimension_numbers = #tpu.dot_dimension_numbers<[1], [0], [0], [1], [0, 0, 1, 1], [], []>} : vector<2x32xf32>, vector<32x128xf32>, vector<2x128xf32> -> vector<2x128xf32>
    %cst_33 = arith.constant dense<0.000000e+00> : vector<2x128xf32>
    %78 = tpu.matmul %59, %17, %cst_33 {dimension_numbers = #tpu.dot_dimension_numbers<[1], [0], [0], [1], [0, 0, 1, 1], [], []>} : vector<2x32xf32>, vector<32x128xf32>, vector<2x128xf32> -> vector<2x128xf32>
    %79 = arith.addf %77, %78 : vector<2x128xf32>
    %80 = arith.addf %79, %20 : vector<2x128xf32>
    %81 = math.tanh %80 : vector<2x128xf32>
    %cst_34 = arith.constant 5.000000e-01 : f32
    %82 = vector.broadcast %cst_34 : f32 to vector<2x128xf32>
    %83 = arith.mulf %82, %81 : vector<2x128xf32>
    %cst_35 = arith.constant 5.000000e-01 : f32
    %84 = vector.broadcast %cst_35 : f32 to vector<2x128xf32>
    %85 = arith.addf %83, %84 : vector<2x128xf32>
    %86 = vector.extract_strided_slice %85 {offsets = [0, 0], sizes = [2, 32], strides = [1, 1]} : vector<2x128xf32> to vector<2x32xf32>
    %87 = vector.extract_strided_slice %85 {offsets = [0, 32], sizes = [2, 32], strides = [1, 1]} : vector<2x128xf32> to vector<2x32xf32>
    %88 = vector.extract_strided_slice %81 {offsets = [0, 64], sizes = [2, 32], strides = [1, 1]} : vector<2x128xf32> to vector<2x32xf32>
    %89 = vector.extract_strided_slice %85 {offsets = [0, 96], sizes = [2, 32], strides = [1, 1]} : vector<2x128xf32> to vector<2x32xf32>
    %90 = arith.mulf %87, %57 : vector<2x32xf32>
    %91 = arith.mulf %86, %88 : vector<2x32xf32>
    %92 = arith.addf %90, %91 : vector<2x32xf32>
    %93 = math.tanh %92 : vector<2x32xf32>
    %94 = arith.mulf %89, %93 : vector<2x32xf32>
    %95 = vector.extract_strided_slice %14 {offsets = [4, 0], sizes = [2, 128], strides = [1, 1]} : vector<16x128xf32> to vector<2x128xf32>
    %cst_36 = arith.constant dense<0.000000e+00> : vector<2x128xf32>
    %96 = tpu.matmul %76, %15, %cst_36 {dimension_numbers = #tpu.dot_dimension_numbers<[1], [0], [0], [1], [0, 0, 1, 1], [], []>} : vector<2x32xf32>, vector<32x128xf32>, vector<2x128xf32> -> vector<2x128xf32>
    %97 = arith.addf %95, %96 : vector<2x128xf32>
    %98 = math.tanh %97 : vector<2x128xf32>
    %cst_37 = arith.constant 5.000000e-01 : f32
    %99 = vector.broadcast %cst_37 : f32 to vector<2x128xf32>
    %100 = arith.mulf %99, %98 : vector<2x128xf32>
    %cst_38 = arith.constant 5.000000e-01 : f32
    %101 = vector.broadcast %cst_38 : f32 to vector<2x128xf32>
    %102 = arith.addf %100, %101 : vector<2x128xf32>
    %103 = vector.extract_strided_slice %102 {offsets = [0, 0], sizes = [2, 32], strides = [1, 1]} : vector<2x128xf32> to vector<2x32xf32>
    %104 = vector.extract_strided_slice %102 {offsets = [0, 32], sizes = [2, 32], strides = [1, 1]} : vector<2x128xf32> to vector<2x32xf32>
    %105 = vector.extract_strided_slice %98 {offsets = [0, 64], sizes = [2, 32], strides = [1, 1]} : vector<2x128xf32> to vector<2x32xf32>
    %106 = vector.extract_strided_slice %102 {offsets = [0, 96], sizes = [2, 32], strides = [1, 1]} : vector<2x128xf32> to vector<2x32xf32>
    %107 = arith.mulf %104, %74 : vector<2x32xf32>
    %108 = arith.mulf %103, %105 : vector<2x32xf32>
    %109 = arith.addf %107, %108 : vector<2x32xf32>
    %110 = math.tanh %109 : vector<2x32xf32>
    %111 = arith.mulf %106, %110 : vector<2x32xf32>
    %cst_39 = arith.constant dense<0.000000e+00> : vector<2x128xf32>
    %112 = tpu.matmul %111, %16, %cst_39 {dimension_numbers = #tpu.dot_dimension_numbers<[1], [0], [0], [1], [0, 0, 1, 1], [], []>} : vector<2x32xf32>, vector<32x128xf32>, vector<2x128xf32> -> vector<2x128xf32>
    %cst_40 = arith.constant dense<0.000000e+00> : vector<2x128xf32>
    %113 = tpu.matmul %94, %17, %cst_40 {dimension_numbers = #tpu.dot_dimension_numbers<[1], [0], [0], [1], [0, 0, 1, 1], [], []>} : vector<2x32xf32>, vector<32x128xf32>, vector<2x128xf32> -> vector<2x128xf32>
    %114 = arith.addf %112, %113 : vector<2x128xf32>
    %115 = arith.addf %114, %20 : vector<2x128xf32>
    %116 = math.tanh %115 : vector<2x128xf32>
    %cst_41 = arith.constant 5.000000e-01 : f32
    %117 = vector.broadcast %cst_41 : f32 to vector<2x128xf32>
    %118 = arith.mulf %117, %116 : vector<2x128xf32>
    %cst_42 = arith.constant 5.000000e-01 : f32
    %119 = vector.broadcast %cst_42 : f32 to vector<2x128xf32>
    %120 = arith.addf %118, %119 : vector<2x128xf32>
    %121 = vector.extract_strided_slice %120 {offsets = [0, 0], sizes = [2, 32], strides = [1, 1]} : vector<2x128xf32> to vector<2x32xf32>
    %122 = vector.extract_strided_slice %120 {offsets = [0, 32], sizes = [2, 32], strides = [1, 1]} : vector<2x128xf32> to vector<2x32xf32>
    %123 = vector.extract_strided_slice %116 {offsets = [0, 64], sizes = [2, 32], strides = [1, 1]} : vector<2x128xf32> to vector<2x32xf32>
    %124 = vector.extract_strided_slice %120 {offsets = [0, 96], sizes = [2, 32], strides = [1, 1]} : vector<2x128xf32> to vector<2x32xf32>
    %125 = arith.mulf %122, %92 : vector<2x32xf32>
    %126 = arith.mulf %121, %123 : vector<2x32xf32>
    %127 = arith.addf %125, %126 : vector<2x32xf32>
    %128 = math.tanh %127 : vector<2x32xf32>
    %129 = arith.mulf %124, %128 : vector<2x32xf32>
    %130 = vector.extract_strided_slice %14 {offsets = [6, 0], sizes = [2, 128], strides = [1, 1]} : vector<16x128xf32> to vector<2x128xf32>
    %cst_43 = arith.constant dense<0.000000e+00> : vector<2x128xf32>
    %131 = tpu.matmul %111, %15, %cst_43 {dimension_numbers = #tpu.dot_dimension_numbers<[1], [0], [0], [1], [0, 0, 1, 1], [], []>} : vector<2x32xf32>, vector<32x128xf32>, vector<2x128xf32> -> vector<2x128xf32>
    %132 = arith.addf %130, %131 : vector<2x128xf32>
    %133 = math.tanh %132 : vector<2x128xf32>
    %cst_44 = arith.constant 5.000000e-01 : f32
    %134 = vector.broadcast %cst_44 : f32 to vector<2x128xf32>
    %135 = arith.mulf %134, %133 : vector<2x128xf32>
    %cst_45 = arith.constant 5.000000e-01 : f32
    %136 = vector.broadcast %cst_45 : f32 to vector<2x128xf32>
    %137 = arith.addf %135, %136 : vector<2x128xf32>
    %138 = vector.extract_strided_slice %137 {offsets = [0, 0], sizes = [2, 32], strides = [1, 1]} : vector<2x128xf32> to vector<2x32xf32>
    %139 = vector.extract_strided_slice %137 {offsets = [0, 32], sizes = [2, 32], strides = [1, 1]} : vector<2x128xf32> to vector<2x32xf32>
    %140 = vector.extract_strided_slice %133 {offsets = [0, 64], sizes = [2, 32], strides = [1, 1]} : vector<2x128xf32> to vector<2x32xf32>
    %141 = vector.extract_strided_slice %137 {offsets = [0, 96], sizes = [2, 32], strides = [1, 1]} : vector<2x128xf32> to vector<2x32xf32>
    %142 = arith.mulf %139, %109 : vector<2x32xf32>
    %143 = arith.mulf %138, %140 : vector<2x32xf32>
    %144 = arith.addf %142, %143 : vector<2x32xf32>
    %145 = math.tanh %144 : vector<2x32xf32>
    %146 = arith.mulf %141, %145 : vector<2x32xf32>
    %cst_46 = arith.constant dense<0.000000e+00> : vector<2x128xf32>
    %147 = tpu.matmul %146, %16, %cst_46 {dimension_numbers = #tpu.dot_dimension_numbers<[1], [0], [0], [1], [0, 0, 1, 1], [], []>} : vector<2x32xf32>, vector<32x128xf32>, vector<2x128xf32> -> vector<2x128xf32>
    %cst_47 = arith.constant dense<0.000000e+00> : vector<2x128xf32>
    %148 = tpu.matmul %129, %17, %cst_47 {dimension_numbers = #tpu.dot_dimension_numbers<[1], [0], [0], [1], [0, 0, 1, 1], [], []>} : vector<2x32xf32>, vector<32x128xf32>, vector<2x128xf32> -> vector<2x128xf32>
    %149 = arith.addf %147, %148 : vector<2x128xf32>
    %150 = arith.addf %149, %20 : vector<2x128xf32>
    %151 = math.tanh %150 : vector<2x128xf32>
    %cst_48 = arith.constant 5.000000e-01 : f32
    %152 = vector.broadcast %cst_48 : f32 to vector<2x128xf32>
    %153 = arith.mulf %152, %151 : vector<2x128xf32>
    %cst_49 = arith.constant 5.000000e-01 : f32
    %154 = vector.broadcast %cst_49 : f32 to vector<2x128xf32>
    %155 = arith.addf %153, %154 : vector<2x128xf32>
    %156 = vector.extract_strided_slice %155 {offsets = [0, 0], sizes = [2, 32], strides = [1, 1]} : vector<2x128xf32> to vector<2x32xf32>
    %157 = vector.extract_strided_slice %155 {offsets = [0, 32], sizes = [2, 32], strides = [1, 1]} : vector<2x128xf32> to vector<2x32xf32>
    %158 = vector.extract_strided_slice %151 {offsets = [0, 64], sizes = [2, 32], strides = [1, 1]} : vector<2x128xf32> to vector<2x32xf32>
    %159 = vector.extract_strided_slice %155 {offsets = [0, 96], sizes = [2, 32], strides = [1, 1]} : vector<2x128xf32> to vector<2x32xf32>
    %160 = arith.mulf %157, %127 : vector<2x32xf32>
    %161 = arith.mulf %156, %158 : vector<2x32xf32>
    %162 = arith.addf %160, %161 : vector<2x32xf32>
    %163 = math.tanh %162 : vector<2x32xf32>
    %164 = arith.mulf %159, %163 : vector<2x32xf32>
    %165 = vector.extract_strided_slice %14 {offsets = [8, 0], sizes = [2, 128], strides = [1, 1]} : vector<16x128xf32> to vector<2x128xf32>
    %cst_50 = arith.constant dense<0.000000e+00> : vector<2x128xf32>
    %166 = tpu.matmul %146, %15, %cst_50 {dimension_numbers = #tpu.dot_dimension_numbers<[1], [0], [0], [1], [0, 0, 1, 1], [], []>} : vector<2x32xf32>, vector<32x128xf32>, vector<2x128xf32> -> vector<2x128xf32>
    %167 = arith.addf %165, %166 : vector<2x128xf32>
    %168 = math.tanh %167 : vector<2x128xf32>
    %cst_51 = arith.constant 5.000000e-01 : f32
    %169 = vector.broadcast %cst_51 : f32 to vector<2x128xf32>
    %170 = arith.mulf %169, %168 : vector<2x128xf32>
    %cst_52 = arith.constant 5.000000e-01 : f32
    %171 = vector.broadcast %cst_52 : f32 to vector<2x128xf32>
    %172 = arith.addf %170, %171 : vector<2x128xf32>
    %173 = vector.extract_strided_slice %172 {offsets = [0, 0], sizes = [2, 32], strides = [1, 1]} : vector<2x128xf32> to vector<2x32xf32>
    %174 = vector.extract_strided_slice %172 {offsets = [0, 32], sizes = [2, 32], strides = [1, 1]} : vector<2x128xf32> to vector<2x32xf32>
    %175 = vector.extract_strided_slice %168 {offsets = [0, 64], sizes = [2, 32], strides = [1, 1]} : vector<2x128xf32> to vector<2x32xf32>
    %176 = vector.extract_strided_slice %172 {offsets = [0, 96], sizes = [2, 32], strides = [1, 1]} : vector<2x128xf32> to vector<2x32xf32>
    %177 = arith.mulf %174, %144 : vector<2x32xf32>
    %178 = arith.mulf %173, %175 : vector<2x32xf32>
    %179 = arith.addf %177, %178 : vector<2x32xf32>
    %180 = math.tanh %179 : vector<2x32xf32>
    %181 = arith.mulf %176, %180 : vector<2x32xf32>
    %cst_53 = arith.constant dense<0.000000e+00> : vector<2x128xf32>
    %182 = tpu.matmul %181, %16, %cst_53 {dimension_numbers = #tpu.dot_dimension_numbers<[1], [0], [0], [1], [0, 0, 1, 1], [], []>} : vector<2x32xf32>, vector<32x128xf32>, vector<2x128xf32> -> vector<2x128xf32>
    %cst_54 = arith.constant dense<0.000000e+00> : vector<2x128xf32>
    %183 = tpu.matmul %164, %17, %cst_54 {dimension_numbers = #tpu.dot_dimension_numbers<[1], [0], [0], [1], [0, 0, 1, 1], [], []>} : vector<2x32xf32>, vector<32x128xf32>, vector<2x128xf32> -> vector<2x128xf32>
    %184 = arith.addf %182, %183 : vector<2x128xf32>
    %185 = arith.addf %184, %20 : vector<2x128xf32>
    %186 = math.tanh %185 : vector<2x128xf32>
    %cst_55 = arith.constant 5.000000e-01 : f32
    %187 = vector.broadcast %cst_55 : f32 to vector<2x128xf32>
    %188 = arith.mulf %187, %186 : vector<2x128xf32>
    %cst_56 = arith.constant 5.000000e-01 : f32
    %189 = vector.broadcast %cst_56 : f32 to vector<2x128xf32>
    %190 = arith.addf %188, %189 : vector<2x128xf32>
    %191 = vector.extract_strided_slice %190 {offsets = [0, 0], sizes = [2, 32], strides = [1, 1]} : vector<2x128xf32> to vector<2x32xf32>
    %192 = vector.extract_strided_slice %190 {offsets = [0, 32], sizes = [2, 32], strides = [1, 1]} : vector<2x128xf32> to vector<2x32xf32>
    %193 = vector.extract_strided_slice %186 {offsets = [0, 64], sizes = [2, 32], strides = [1, 1]} : vector<2x128xf32> to vector<2x32xf32>
    %194 = vector.extract_strided_slice %190 {offsets = [0, 96], sizes = [2, 32], strides = [1, 1]} : vector<2x128xf32> to vector<2x32xf32>
    %195 = arith.mulf %192, %162 : vector<2x32xf32>
    %196 = arith.mulf %191, %193 : vector<2x32xf32>
    %197 = arith.addf %195, %196 : vector<2x32xf32>
    %198 = math.tanh %197 : vector<2x32xf32>
    %199 = arith.mulf %194, %198 : vector<2x32xf32>
    %200 = vector.extract_strided_slice %14 {offsets = [10, 0], sizes = [2, 128], strides = [1, 1]} : vector<16x128xf32> to vector<2x128xf32>
    %cst_57 = arith.constant dense<0.000000e+00> : vector<2x128xf32>
    %201 = tpu.matmul %181, %15, %cst_57 {dimension_numbers = #tpu.dot_dimension_numbers<[1], [0], [0], [1], [0, 0, 1, 1], [], []>} : vector<2x32xf32>, vector<32x128xf32>, vector<2x128xf32> -> vector<2x128xf32>
    %202 = arith.addf %200, %201 : vector<2x128xf32>
    %203 = math.tanh %202 : vector<2x128xf32>
    %cst_58 = arith.constant 5.000000e-01 : f32
    %204 = vector.broadcast %cst_58 : f32 to vector<2x128xf32>
    %205 = arith.mulf %204, %203 : vector<2x128xf32>
    %cst_59 = arith.constant 5.000000e-01 : f32
    %206 = vector.broadcast %cst_59 : f32 to vector<2x128xf32>
    %207 = arith.addf %205, %206 : vector<2x128xf32>
    %208 = vector.extract_strided_slice %207 {offsets = [0, 0], sizes = [2, 32], strides = [1, 1]} : vector<2x128xf32> to vector<2x32xf32>
    %209 = vector.extract_strided_slice %207 {offsets = [0, 32], sizes = [2, 32], strides = [1, 1]} : vector<2x128xf32> to vector<2x32xf32>
    %210 = vector.extract_strided_slice %203 {offsets = [0, 64], sizes = [2, 32], strides = [1, 1]} : vector<2x128xf32> to vector<2x32xf32>
    %211 = vector.extract_strided_slice %207 {offsets = [0, 96], sizes = [2, 32], strides = [1, 1]} : vector<2x128xf32> to vector<2x32xf32>
    %212 = arith.mulf %209, %179 : vector<2x32xf32>
    %213 = arith.mulf %208, %210 : vector<2x32xf32>
    %214 = arith.addf %212, %213 : vector<2x32xf32>
    %215 = math.tanh %214 : vector<2x32xf32>
    %216 = arith.mulf %211, %215 : vector<2x32xf32>
    %cst_60 = arith.constant dense<0.000000e+00> : vector<2x128xf32>
    %217 = tpu.matmul %216, %16, %cst_60 {dimension_numbers = #tpu.dot_dimension_numbers<[1], [0], [0], [1], [0, 0, 1, 1], [], []>} : vector<2x32xf32>, vector<32x128xf32>, vector<2x128xf32> -> vector<2x128xf32>
    %cst_61 = arith.constant dense<0.000000e+00> : vector<2x128xf32>
    %218 = tpu.matmul %199, %17, %cst_61 {dimension_numbers = #tpu.dot_dimension_numbers<[1], [0], [0], [1], [0, 0, 1, 1], [], []>} : vector<2x32xf32>, vector<32x128xf32>, vector<2x128xf32> -> vector<2x128xf32>
    %219 = arith.addf %217, %218 : vector<2x128xf32>
    %220 = arith.addf %219, %20 : vector<2x128xf32>
    %221 = math.tanh %220 : vector<2x128xf32>
    %cst_62 = arith.constant 5.000000e-01 : f32
    %222 = vector.broadcast %cst_62 : f32 to vector<2x128xf32>
    %223 = arith.mulf %222, %221 : vector<2x128xf32>
    %cst_63 = arith.constant 5.000000e-01 : f32
    %224 = vector.broadcast %cst_63 : f32 to vector<2x128xf32>
    %225 = arith.addf %223, %224 : vector<2x128xf32>
    %226 = vector.extract_strided_slice %225 {offsets = [0, 0], sizes = [2, 32], strides = [1, 1]} : vector<2x128xf32> to vector<2x32xf32>
    %227 = vector.extract_strided_slice %225 {offsets = [0, 32], sizes = [2, 32], strides = [1, 1]} : vector<2x128xf32> to vector<2x32xf32>
    %228 = vector.extract_strided_slice %221 {offsets = [0, 64], sizes = [2, 32], strides = [1, 1]} : vector<2x128xf32> to vector<2x32xf32>
    %229 = vector.extract_strided_slice %225 {offsets = [0, 96], sizes = [2, 32], strides = [1, 1]} : vector<2x128xf32> to vector<2x32xf32>
    %230 = arith.mulf %227, %197 : vector<2x32xf32>
    %231 = arith.mulf %226, %228 : vector<2x32xf32>
    %232 = arith.addf %230, %231 : vector<2x32xf32>
    %233 = math.tanh %232 : vector<2x32xf32>
    %234 = arith.mulf %229, %233 : vector<2x32xf32>
    %235 = vector.extract_strided_slice %14 {offsets = [12, 0], sizes = [2, 128], strides = [1, 1]} : vector<16x128xf32> to vector<2x128xf32>
    %cst_64 = arith.constant dense<0.000000e+00> : vector<2x128xf32>
    %236 = tpu.matmul %216, %15, %cst_64 {dimension_numbers = #tpu.dot_dimension_numbers<[1], [0], [0], [1], [0, 0, 1, 1], [], []>} : vector<2x32xf32>, vector<32x128xf32>, vector<2x128xf32> -> vector<2x128xf32>
    %237 = arith.addf %235, %236 : vector<2x128xf32>
    %238 = math.tanh %237 : vector<2x128xf32>
    %cst_65 = arith.constant 5.000000e-01 : f32
    %239 = vector.broadcast %cst_65 : f32 to vector<2x128xf32>
    %240 = arith.mulf %239, %238 : vector<2x128xf32>
    %cst_66 = arith.constant 5.000000e-01 : f32
    %241 = vector.broadcast %cst_66 : f32 to vector<2x128xf32>
    %242 = arith.addf %240, %241 : vector<2x128xf32>
    %243 = vector.extract_strided_slice %242 {offsets = [0, 0], sizes = [2, 32], strides = [1, 1]} : vector<2x128xf32> to vector<2x32xf32>
    %244 = vector.extract_strided_slice %242 {offsets = [0, 32], sizes = [2, 32], strides = [1, 1]} : vector<2x128xf32> to vector<2x32xf32>
    %245 = vector.extract_strided_slice %238 {offsets = [0, 64], sizes = [2, 32], strides = [1, 1]} : vector<2x128xf32> to vector<2x32xf32>
    %246 = vector.extract_strided_slice %242 {offsets = [0, 96], sizes = [2, 32], strides = [1, 1]} : vector<2x128xf32> to vector<2x32xf32>
    %247 = arith.mulf %244, %214 : vector<2x32xf32>
    %248 = arith.mulf %243, %245 : vector<2x32xf32>
    %249 = arith.addf %247, %248 : vector<2x32xf32>
    %250 = math.tanh %249 : vector<2x32xf32>
    %251 = arith.mulf %246, %250 : vector<2x32xf32>
    %cst_67 = arith.constant dense<0.000000e+00> : vector<2x128xf32>
    %252 = tpu.matmul %251, %16, %cst_67 {dimension_numbers = #tpu.dot_dimension_numbers<[1], [0], [0], [1], [0, 0, 1, 1], [], []>} : vector<2x32xf32>, vector<32x128xf32>, vector<2x128xf32> -> vector<2x128xf32>
    %cst_68 = arith.constant dense<0.000000e+00> : vector<2x128xf32>
    %253 = tpu.matmul %234, %17, %cst_68 {dimension_numbers = #tpu.dot_dimension_numbers<[1], [0], [0], [1], [0, 0, 1, 1], [], []>} : vector<2x32xf32>, vector<32x128xf32>, vector<2x128xf32> -> vector<2x128xf32>
    %254 = arith.addf %252, %253 : vector<2x128xf32>
    %255 = arith.addf %254, %20 : vector<2x128xf32>
    %256 = math.tanh %255 : vector<2x128xf32>
    %cst_69 = arith.constant 5.000000e-01 : f32
    %257 = vector.broadcast %cst_69 : f32 to vector<2x128xf32>
    %258 = arith.mulf %257, %256 : vector<2x128xf32>
    %cst_70 = arith.constant 5.000000e-01 : f32
    %259 = vector.broadcast %cst_70 : f32 to vector<2x128xf32>
    %260 = arith.addf %258, %259 : vector<2x128xf32>
    %261 = vector.extract_strided_slice %260 {offsets = [0, 0], sizes = [2, 32], strides = [1, 1]} : vector<2x128xf32> to vector<2x32xf32>
    %262 = vector.extract_strided_slice %260 {offsets = [0, 32], sizes = [2, 32], strides = [1, 1]} : vector<2x128xf32> to vector<2x32xf32>
    %263 = vector.extract_strided_slice %256 {offsets = [0, 64], sizes = [2, 32], strides = [1, 1]} : vector<2x128xf32> to vector<2x32xf32>
    %264 = vector.extract_strided_slice %260 {offsets = [0, 96], sizes = [2, 32], strides = [1, 1]} : vector<2x128xf32> to vector<2x32xf32>
    %265 = arith.mulf %262, %232 : vector<2x32xf32>
    %266 = arith.mulf %261, %263 : vector<2x32xf32>
    %267 = arith.addf %265, %266 : vector<2x32xf32>
    %268 = math.tanh %267 : vector<2x32xf32>
    %269 = arith.mulf %264, %268 : vector<2x32xf32>
    %270 = vector.extract_strided_slice %14 {offsets = [14, 0], sizes = [2, 128], strides = [1, 1]} : vector<16x128xf32> to vector<2x128xf32>
    %cst_71 = arith.constant dense<0.000000e+00> : vector<2x128xf32>
    %271 = tpu.matmul %251, %15, %cst_71 {dimension_numbers = #tpu.dot_dimension_numbers<[1], [0], [0], [1], [0, 0, 1, 1], [], []>} : vector<2x32xf32>, vector<32x128xf32>, vector<2x128xf32> -> vector<2x128xf32>
    %272 = arith.addf %270, %271 : vector<2x128xf32>
    %273 = math.tanh %272 : vector<2x128xf32>
    %cst_72 = arith.constant 5.000000e-01 : f32
    %274 = vector.broadcast %cst_72 : f32 to vector<2x128xf32>
    %275 = arith.mulf %274, %273 : vector<2x128xf32>
    %cst_73 = arith.constant 5.000000e-01 : f32
    %276 = vector.broadcast %cst_73 : f32 to vector<2x128xf32>
    %277 = arith.addf %275, %276 : vector<2x128xf32>
    %278 = vector.extract_strided_slice %277 {offsets = [0, 0], sizes = [2, 32], strides = [1, 1]} : vector<2x128xf32> to vector<2x32xf32>
    %279 = vector.extract_strided_slice %277 {offsets = [0, 32], sizes = [2, 32], strides = [1, 1]} : vector<2x128xf32> to vector<2x32xf32>
    %280 = vector.extract_strided_slice %273 {offsets = [0, 64], sizes = [2, 32], strides = [1, 1]} : vector<2x128xf32> to vector<2x32xf32>
    %281 = vector.extract_strided_slice %277 {offsets = [0, 96], sizes = [2, 32], strides = [1, 1]} : vector<2x128xf32> to vector<2x32xf32>
    %282 = arith.mulf %279, %249 : vector<2x32xf32>
    %283 = arith.mulf %278, %280 : vector<2x32xf32>
    %284 = arith.addf %282, %283 : vector<2x32xf32>
    %285 = math.tanh %284 : vector<2x32xf32>
    %286 = arith.mulf %281, %285 : vector<2x32xf32>
    %cst_74 = arith.constant dense<0.000000e+00> : vector<2x128xf32>
    %287 = tpu.matmul %286, %16, %cst_74 {dimension_numbers = #tpu.dot_dimension_numbers<[1], [0], [0], [1], [0, 0, 1, 1], [], []>} : vector<2x32xf32>, vector<32x128xf32>, vector<2x128xf32> -> vector<2x128xf32>
    %cst_75 = arith.constant dense<0.000000e+00> : vector<2x128xf32>
    %288 = tpu.matmul %269, %17, %cst_75 {dimension_numbers = #tpu.dot_dimension_numbers<[1], [0], [0], [1], [0, 0, 1, 1], [], []>} : vector<2x32xf32>, vector<32x128xf32>, vector<2x128xf32> -> vector<2x128xf32>
    %289 = arith.addf %287, %288 : vector<2x128xf32>
    %290 = arith.addf %289, %20 : vector<2x128xf32>
    %291 = math.tanh %290 : vector<2x128xf32>
    %cst_76 = arith.constant 5.000000e-01 : f32
    %292 = vector.broadcast %cst_76 : f32 to vector<2x128xf32>
    %293 = arith.mulf %292, %291 : vector<2x128xf32>
    %cst_77 = arith.constant 5.000000e-01 : f32
    %294 = vector.broadcast %cst_77 : f32 to vector<2x128xf32>
    %295 = arith.addf %293, %294 : vector<2x128xf32>
    %296 = vector.extract_strided_slice %295 {offsets = [0, 0], sizes = [2, 32], strides = [1, 1]} : vector<2x128xf32> to vector<2x32xf32>
    %297 = vector.extract_strided_slice %295 {offsets = [0, 32], sizes = [2, 32], strides = [1, 1]} : vector<2x128xf32> to vector<2x32xf32>
    %298 = vector.extract_strided_slice %291 {offsets = [0, 64], sizes = [2, 32], strides = [1, 1]} : vector<2x128xf32> to vector<2x32xf32>
    %299 = vector.extract_strided_slice %295 {offsets = [0, 96], sizes = [2, 32], strides = [1, 1]} : vector<2x128xf32> to vector<2x32xf32>
    %300 = arith.mulf %297, %267 : vector<2x32xf32>
    %301 = arith.mulf %296, %298 : vector<2x32xf32>
    %302 = arith.addf %300, %301 : vector<2x32xf32>
    %303 = math.tanh %302 : vector<2x32xf32>
    %304 = arith.mulf %299, %303 : vector<2x32xf32>
    %c0_78 = arith.constant 0 : index
    %c0_79 = arith.constant 0 : index
    %305 = vector.load %arg10[%c0_78, %c0_79] : memref<32x1xf32, #tpu.memory_space<vmem>>, vector<32x1xf32>
    %cst_80 = arith.constant dense<0.000000e+00> : vector<2x1xf32>
    %306 = tpu.matmul %286, %305, %cst_80 {dimension_numbers = #tpu.dot_dimension_numbers<[1], [0], [0], [1], [0, 0, 1, 1], [], []>} : vector<2x32xf32>, vector<32x1xf32>, vector<2x1xf32> -> vector<2x1xf32>
    %c0_81 = arith.constant 0 : index
    %c0_82 = arith.constant 0 : index
    %307 = vector.load %arg11[%c0_81, %c0_82] : memref<32x1xf32, #tpu.memory_space<vmem>>, vector<32x1xf32>
    %cst_83 = arith.constant dense<0.000000e+00> : vector<2x1xf32>
    %308 = tpu.matmul %304, %307, %cst_83 {dimension_numbers = #tpu.dot_dimension_numbers<[1], [0], [0], [1], [0, 0, 1, 1], [], []>} : vector<2x32xf32>, vector<32x1xf32>, vector<2x1xf32> -> vector<2x1xf32>
    %309 = arith.addf %306, %308 : vector<2x1xf32>
    %c0_84 = arith.constant 0 : index
    %c0_85 = arith.constant 0 : index
    %310 = vector.load %arg12[%c0_84, %c0_85] : memref<1x1xf32, #tpu.memory_space<vmem>>, vector<1x1xf32>
    %311 = vector.broadcast %310 : vector<1x1xf32> to vector<2x1xf32>
    %312 = arith.addf %309, %311 : vector<2x1xf32>
    %c0_86 = arith.constant 0 : index
    %c0_87 = arith.constant 0 : index
    %313 = vector.load %arg13[%c0_86, %c0_87] : memref<2x1xf32, #tpu.memory_space<vmem>>, vector<2x1xf32>
    tpu.vector_store %arg13[%c0_86, %c0_87], %312 {strides = array<i32>} : memref<2x1xf32, #tpu.memory_space<vmem>>, vector<2x1xf32>,
    return
  }
  func.func @transform_0(%arg0: i32) -> (i32, i32) {
    %c0_i32 = arith.constant 0 : i32
    %c0_i32_0 = arith.constant 0 : i32
    %c0_i32_1 = arith.constant 0 : i32
    return %c0_i32, %c0_i32_0 : i32, i32
  }
  func.func @transform_1(%arg0: i32) -> (i32, i32) {
    %c0_i32 = arith.constant 0 : i32
    %c0_i32_0 = arith.constant 0 : i32
    %c0_i32_1 = arith.constant 0 : i32
    return %c0_i32, %c0_i32_0 : i32, i32
  }
  func.func @transform_2(%arg0: i32) -> (i32, i32) {
    %c0_i32 = arith.constant 0 : i32
    %c0_i32_0 = arith.constant 0 : i32
    %c0_i32_1 = arith.constant 0 : i32
    return %c0_i32, %c0_i32_0 : i32, i32
  }
  func.func @transform_3(%arg0: i32) -> (i32, i32) {
    %c0_i32 = arith.constant 0 : i32
    %c0_i32_0 = arith.constant 0 : i32
    %c0_i32_1 = arith.constant 0 : i32
    return %c0_i32, %c0_i32_0 : i32, i32
  }
  func.func @transform_4(%arg0: i32) -> (i32, i32) {
    %c0_i32 = arith.constant 0 : i32
    %c0_i32_0 = arith.constant 0 : i32
    %c0_i32_1 = arith.constant 0 : i32
    return %c0_i32, %c0_i32_0 : i32, i32
  }
  func.func @transform_5(%arg0: i32) -> (i32, i32) {
    %c0_i32 = arith.constant 0 : i32
    %c0_i32_0 = arith.constant 0 : i32
    %c0_i32_1 = arith.constant 0 : i32
    return %c0_i32, %c0_i32_0 : i32, i32
  }
  func.func @transform_6(%arg0: i32) -> (i32, i32) {
    %c0_i32 = arith.constant 0 : i32
    %c0_i32_0 = arith.constant 0 : i32
    %c0_i32_1 = arith.constant 0 : i32
    return %c0_i32, %c0_i32_0 : i32, i32
  }
  func.func @transform_7(%arg0: i32) -> (i32, i32) {
    %c0_i32 = arith.constant 0 : i32
    %c0_i32_0 = arith.constant 0 : i32
    %c0_i32_1 = arith.constant 0 : i32
    return %c0_i32, %c0_i32_0 : i32, i32
  }
  func.func @transform_8(%arg0: i32) -> (i32, i32) {
    %c0_i32 = arith.constant 0 : i32
    %c0_i32_0 = arith.constant 0 : i32
    %c0_i32_1 = arith.constant 0 : i32
    return %c0_i32, %c0_i32_0 : i32, i32
  }
  func.func @transform_9(%arg0: i32) -> (i32, i32) {
    %c0_i32 = arith.constant 0 : i32
    %c0_i32_0 = arith.constant 0 : i32
    %c0_i32_1 = arith.constant 0 : i32
    return %c0_i32, %c0_i32_0 : i32, i32
  }
  func.func @transform_10(%arg0: i32) -> (i32, i32) {
    %c0_i32 = arith.constant 0 : i32
    %c0_i32_0 = arith.constant 0 : i32
    %c0_i32_1 = arith.constant 0 : i32
    return %c0_i32, %c0_i32_0 : i32, i32
  }
  func.func @transform_11(%arg0: i32) -> (i32, i32) {
    %c0_i32 = arith.constant 0 : i32
    %c0_i32_0 = arith.constant 0 : i32
    %c0_i32_1 = arith.constant 0 : i32
    return %c0_i32, %c0_i32_0 : i32, i32
  }
  func.func @transform_12(%arg0: i32) -> (i32, i32) {
    %c0_i32 = arith.constant 0 : i32
    %c0_i32_0 = arith.constant 0 : i32
    %c0_i32_1 = arith.constant 0 : i32
    return %c0_i32, %c0_i32_0 : i32, i32
  }
}

</mosaic_0001>

<bundles_post_ra>
// kernel: lstm_model_forward.1
= control target key start
LH: loop header
LB: loop body
LE: loop exit
PB: predicated region body
PF: predicated region fallthrough
CT: control target
= control target key end

     0   :  { %s3717_s0 = inlined_call_operand.vmem [shape: f32[16,1], index: 0, kind: input, shape index: {}]   ;;  %s3718_s1 = inlined_call_operand.vmem [shape: f32[1,32], index: 1, kind: input, shape index: {}]   ;;  %s3719_s2 = inlined_call_operand.vmem [shape: f32[1,32], index: 2, kind: input, shape index: {}]   ;;  %s3720_s3 = inlined_call_operand.vmem [shape: f32[32,128], index: 3, kind: input, shape index: {}]   ;;  %s3721_s4 = inlined_call_operand.vmem [shape: f32[32,128], index: 4, kind: input, shape index: {}]   ;;  %s3722_s5 = inlined_call_operand.hbm [shape: f32[1,128], index: 5, kind: input, shape index: {}]   ;;  %s3723_s6 = inlined_call_operand.vmem [shape: f32[32,128], index: 6, kind: input, shape index: {}]   ;;  %s3724_s7 = inlined_call_operand.vmem [shape: f32[32,128], index: 7, kind: input, shape index: {}]   ;;  %s3725_s8 = inlined_call_operand.vmem [shape: f32[1,128], index: 8, kind: input, shape index: {}]   ;;  %s3726_s9 = inlined_call_operand.vmem [shape: f32[32,1], index: 9, kind: input, shape index: {}]   ;;  %s3727_s10 = inlined_call_operand.vmem [shape: f32[32,1], index: 10, kind: input, shape index: {}]   ;;  %s3728_s11 = inlined_call_operand.<no memory space> [shape: f32[1,1], index: 11, kind: input, shape index: {}]   ;;  %s3729_s12 = inlined_call_operand.vmem [shape: f32[2,1], index: 12, kind: output, shape index: {}]  }
   0x1   :  { %v17_v0 = vstv %s3728_s11 }
   0x2   :  { %18 = vst [vmem:[#allocation2] sm:$0x1] %v17_v0 }
   0x3   :  { %19 = vsyncpa [#allocation4], 0  ;;  %s3230_s23 = smov [#allocation3]   ;;  %s3206_s27 = scalar_lea.hbm %s3722_s5, 16 }
   0x4   :  { %s36_s24 = sshll.u32 %s3230_s23, 4  ;;  %p3207_p0 = scmp.ne.s32.totalorder %s3722_s5, %s3206_s27  ;;  %s37_s24 = int_to_ptr.vmem [resolvable:$true] %s36_s24 }
   0x5   :  { %p3210_p1 = scmp.lt.u32.totalorder %s3206_s27, %s3722_s5 }
   0x7   :  { %p3212_p2 = pnand %p3210_p1, %p3207_p0 }
   0x9   :  { %3215 = shalt.err (!%p3212_p2)
}
   0xa   :  { %s3216_s11 = scalar_lea.vmem %s37_s24, 16  ;;  %s3220_s14 = scalar_lea.vmem %s37_s24, 32 }
   0xb   :  { %p3217_p3 = scmp.ne.s32.totalorder %s37_s24, %s3216_s11  ;;  %p3221_p4 = scmp.lt.s32.totalorder %s37_s24, %s37_s24 }
   0xc   :  { %p3222_p5 = scmp.lt.s32.totalorder %s3220_s14, %s3216_s11 }
   0xe   :  { %p3223_p6 = por %p3222_p5, %p3221_p4 }
  0x10   :  { %p3224_p7 = pnand %p3223_p6, %p3217_p3 }
  0x12   :  { %3227 = shalt.err (!%p3224_p7)
}
  0x13   :  { %39 = dma.hbm_to_vmem [thread:$0]  %s3722_s5, 16, %s37_s24, [#allocation4]  }
  0x14   :  { %3228 = dma.done.wait [#allocation4], 16  }
  0x15   :  { %3229 = vsyncadd [#allocation4], 4294967280  ;;  %v3231_v1 = vmov 0   ;;  %v55_v2 = vld [vmem:[%s3717_s0] sm:$0xff]  ;;  %v88_v4 = vld [vmem:[%s3720_s3 + $0x8] sm:$0xff]  ;;  %v3232_v13 = vmov 0.0|0.0  }
  0x16   :  { %3141 = vset.pattern.permute.xlu0 %v3231_v1  ;;  %v87_v3 = vld [vmem:[%s3720_s3] sm:$0xff]  ;;  %v56_v5 = vld [vmem:[%s3717_s0 + $0x8] sm:$0xff]  ;;  %v89_v10 = vld [vmem:[%s3720_s3 + $0x10] sm:$0xff]  ;;  %2978 = vmatprep.subr.bf16.mxu1 %v3232_v13  ;;  %vm3233_vm0 = vmmov 0   ;;  %v3234_v17 = vmov 0.0   ;;  %vm98_vm1 = vcmask 261120  }
  0x17   :  { %60 = vperm.xlu0 %3141, %v55_v2   ;;  %v2970_v6 = vpack.c.bf16 %v88_v4, %v87_v3  ;;  %v180_v7 = vld [vmem:[%s3721_s4] sm:$0xff]  ;;  %v181_v8 = vld [vmem:[%s3721_s4 + $0x8] sm:$0xff]  ;;  %v90_v11 = vld [vmem:[%s3720_s3 + $0x18] sm:$0xff]  ;;  %2692 = vmatprep.mubr.msk.f32.mxu1 %vm3233_vm0, %v3234_v17  ;;  %vm2499_vm2 = vcmask 1024  }
  0x18   :  { %v3335_v9 = vpack.c.bf16 %v181_v8, %v180_v7  ;;  %v2974_v12 = vpack.c.bf16 %v90_v11, %v89_v10  ;;  %v182_v14 = vld [vmem:[%s3721_s4 + $0x10] sm:$0xff]  ;;  %v183_v15 = vld [vmem:[%s3721_s4 + $0x18] sm:$0xff]  ;;  %v2506_v18 = vld [vmem:[%s3718_s1] ss:$0 sm:$0xff]  ;;  %s3235_s1 = smov 64  }
  0x19   :  { %2971 = vmatprep.subr.bf16.mxu0 %v2970_v6  ;;  %v3352_v16 = vpack.c.bf16 %v183_v15, %v182_v14  ;;  %v2507_v20 = vld [vmem:[%s3719_s2] ss:$0 sm:$0xff]  ;;  %v2508_v30 = vld [vmem:[#allocation3] ss:$0 sm:$0xff]  ;;  %s3236_s2 = smov 32   ;;  %v189_v45 = vld [vmem:[%s3724_s7 + $0x8] sm:$0xff] }
  0x1a   :  { %2973 = vmatpush3.bf16.msra.mxu0 %v2970_v6  ;;  %2980 = vmatpush3.bf16.msra.mxu1 %v3335_v9  ;;  %v188_v44 = vld [vmem:[%s3724_s7] sm:$0xff]  ;;  %v190_v46 = vld [vmem:[%s3724_s7 + $0x10] sm:$0xff]  ;;  %v191_v48 = vld [vmem:[%s3724_s7 + $0x18] sm:$0xff] }
  0x1b   :  { %65 = vperm.xlu0 %3141, %v56_v5   ;;  %2975 = vmatprep.subr.bf16.mxu0 %v2974_v12  ;;  %v3391_v47 = vpack.c.bf16 %v189_v45, %v188_v44  ;;  %v184_v49 = vld [vmem:[%s3723_s6] sm:$0xff]  ;;  %v185_v50 = vld [vmem:[%s3723_s6 + $0x8] sm:$0xff]  ;;  %v186_v52 = vld [vmem:[%s3723_s6 + $0x10] sm:$0xff]  ;;  %v3411_v54 = vpack.c.bf16 %v191_v48, %v190_v46 }
  0x1c   :  { %2981 = vmatprep.subr.bf16.mxu1 %v3232_v13  ;;  %v3402_v51 = vpack.c.bf16 %v185_v50, %v184_v49  ;;  %v187_v53 = vld [vmem:[%s3723_s6 + $0x18] sm:$0xff]  ;;  %v3448_v62 = vld [vmem:[%s3725_s8] ss:$0 sm:$0xff] }
  0x1d   :  { %v3415_v55 = vpack.c.bf16 %v187_v53, %v186_v52 }
  0x1e   :  { %2977 = vmatpush3.bf16.msra.mxu0 %v2974_v12  ;;  %2983 = vmatpush3.bf16.msra.mxu1 %v3352_v16 }
  0x1f   :  { %2984 = vmatprep.subr.bf16.mxu0 %v3232_v13  ;;  %2990 = vmatprep.subr.bf16.mxu1 %v3232_v13 }
  0x21   :  { %2693 = vmatmul.mubr.f32.vlgmr.msra.gmra.mrb[0].mxu1 %v3234_v17 }
  0x22   :  { %2714 = vmatprep.mubr.msk.f32.mxu1 %vm3233_vm0, %v3234_v17  ;;  %2992 = vmatpush3.bf16.msra.mxu1 %v3402_v51 }
  0x23   :  { %2993 = vmatprep.subr.bf16.mxu1 %v3232_v13 }
  0x26   :  { %2995 = vmatpush3.bf16.msra.mxu1 %v3415_v55 }
  0x27   :  { %3002 = vmatprep.subr.bf16.mxu1 %v3232_v13 }
  0x96   :  { %v61_v19 = vpop.permute.xlu0 %60 }
  0x97   :  { %v74_v21 = vmul.f32 %v2506_v18, %v61_v19 }
  0x99   :  { %v83_v22 = vadd.f32 %v2507_v20, %v74_v21 }
  0x9a   :  { %v66_v23 = vpop.permute.xlu0 %65 }
  0x9b   :  { %v75_v24 = vmul.f32 %v2506_v18, %v66_v23  ;;  %v85_v25 = vmax.f32 %v83_v22, 0.0 }
  0x9d   :  { %v84_v26 = vadd.f32 %v2507_v20, %v75_v24  ;;  %2681 = vmatprep.mubr.msk.f32.mxu0 %vm98_vm1, %v85_v25 }
  0x9f   :  { %v86_v27 = vmax.f32 %v84_v26, 0.0 }
  0xa1   :  { %2682 = vmatmul.mubr.msk.f32.vlgmr.msra.gmra.mrb[0].mxu0 %vm98_vm1, %v86_v27 }
  0xa2   :  { %2703 = vmatprep.mubr.msk.f32.mxu0 %vm3233_vm0, %v3234_v17  ;;  %2986 = vmatpush3.bf16.msra.mxu0 %v3391_v47 }
  0xa3   :  { %2987 = vmatprep.subr.bf16.mxu0 %v3232_v13 }
  0xa6   :  { %2989 = vmatpush3.bf16.msra.mxu0 %v3411_v54 }
  0xa7   :  { %2996 = vmatprep.subr.bf16.mxu0 %v3232_v13 }
  0xa9   :  { %2704 = vmatmul.mubr.f32.vlgmr.msra.gmra.mrb[2].mxu0 %v3234_v17 }
  0xaa   :  { %2998 = vmatpush3.bf16.msra.mxu0 %v3335_v9  ;;  %2725 = vmatprep.mubr.msk.f32.mxu0 %vm3233_vm0, %v3234_v17 }
  0xab   :  { %2999 = vmatprep.subr.bf16.mxu0 %v3232_v13 }
  0xae   :  { %3001 = vmatpush3.bf16.msra.mxu0 %v3352_v16 }
  0xaf   :  { %3008 = vmatprep.subr.bf16.mxu0 %v3232_v13 }
  0xf4   :  { %v268_v28 = vpop.f32.mrb[0].mxu1 }
  0xf5   :  { %v2694_v29 = vpop.f32.mrb[1].mxu1 }
 0x174   :  { %v2683_v31 = vpop.f32.mrb[0].mxu0 }
 0x175   :  { %v3372_v32 = vadd.f32 %v2683_v31, %v2508_v30  ;;  %v171_v33 = vpop.f32.mrb[1].mxu0 }
 0x176   :  { %v3374_v34 = vadd.f32 %v2508_v30, %v171_v33 }
 0x178   :  { %v272_v35 = vadd.f32 %v268_v28, %v3374_v34 }
 0x17a   :  { %3142 = vtanh.f32 %v272_v35 }
 0x17c   :  { %v359_v59 = vpop.f32.mrb[2].mxu0 }
 0x17d   :  { %v2705_v60 = vpop.f32.mrb[3].mxu0 }
 0x184   :  { %v3143_v36 = vpop.eup %3142 }
 0x185   :  { %278 = vrot.lane.b32.xlu1 %v3143_v36, %s3235_s1  ;;  %v274_v37 = vmul.f32 0.5, %v3143_v36 }
 0x187   :  { %v275_v38 = vadd.f32 0.5, %v274_v37 }
 0x189   :  { %v276_v41 = vmul.f32 0.0, %v275_v38 }
 0x1f7   :  { %v279_v39 = vpop.permute.xlu1 %278 }
 0x1f8   :  { %v281_v40 = vmul.f32 %v279_v39, %v275_v38 }
 0x1fa   :  { %283 = vrot.lane.b32.xlu1 %v281_v40, %s3236_s2 }
 0x26c   :  { %v284_v42 = vpop.permute.xlu1 %283 }
 0x26d   :  { %v3379_v43 = vadd.f32 %v284_v42, %v276_v41 }
 0x26f   :  { %3144 = vtanh.f32 %v3379_v43  ;;  %v537_v21 = vrot.slane %v3379_v43, 6 }
 0x279   :  { %v3145_v56 = vpop.eup %3144 }
 0x27a   :  { %289 = vrot.lane.b32.xlu0 %v3145_v56, %s3235_s1 }
 0x2ec   :  { %v290_v57 = vpop.permute.xlu0 %289 }
 0x2ed   :  { %v292_v58 = vmul.f32 %v290_v57, %v275_v38 }
 0x2ef   :  { %364 = vrot.lane.b32.xlu1 %v292_v58, %s3236_s2 }
 0x361   :  { %v365_v61 = vpop.permute.xlu1 %364 }
 0x362   :  { %2715 = vmatmul.mubr.msk.f32.vlgmr.msra.gmra.mrb[2].mxu1 %vm98_vm1, %v365_v61  ;;  %2726 = vmatmul.mubr.msk.f32.vlgmr.msra.gmra.mrb[4].mxu0 %vm98_vm1, %v365_v61 }
 0x363   :  { %3004 = vmatpush3.bf16.msra.mxu1 %v3391_v47  ;;  %3010 = vmatpush3.bf16.msra.mxu0 %v3402_v51 }
 0x364   :  { %3005 = vmatprep.subr.bf16.mxu1 %v3232_v13  ;;  %3011 = vmatprep.subr.bf16.mxu0 %v3232_v13 }
 0x365   :  { %2736 = vmatprep.mubr.msk.f32.mxu1 %vm3233_vm0, %v3234_v17  ;;  %2747 = vmatprep.mubr.msk.f32.mxu0 %vm3233_vm0, %v3234_v17 }
 0x367   :  { %3007 = vmatpush3.bf16.msra.mxu1 %v3411_v54  ;;  %3013 = vmatpush3.bf16.msra.mxu0 %v3415_v55 }
 0x368   :  { %3014 = vmatprep.subr.bf16.mxu1 %v3232_v13  ;;  %3020 = vmatprep.subr.bf16.mxu0 %v3232_v13 }
 0x435   :  { %v434_v63 = vpop.f32.mrb[2].mxu1  ;;  %v525_v0 = vpop.f32.mrb[4].mxu0 }
 0x436   :  { %v435_v1 = vadd.f32 %v434_v63, %v359_v59  ;;  %v530_v2 = vrot.slane %v525_v0, 6  ;;  %v2716_v3 = vpop.f32.mrb[3].mxu1  ;;  %v2727_v4 = vpop.f32.mrb[5].mxu0 }
 0x438   :  { %v438_v5 = vadd.f32 %v3448_v62, %v435_v1  ;;  %v532_v6 = vadd.f32 %v530_v2, %v3374_v34 }
 0x43a   :  { %3146 = vtanh.f32 %v438_v5 }
 0x43b   :  { %3148 = vtanh.f32 %v532_v6 }
 0x444   :  { %v3147_v7 = vpop.eup %3146 }
 0x445   :  { %v3149_v8 = vpop.eup %3148  ;;  %444 = vrot.lane.b32.xlu0 %v3147_v7, %s3235_s1  ;;  %v440_v10 = vmul.f32 0.5, %v3147_v7 }
 0x446   :  { %541 = vrot.lane.b32.xlu1 %v3149_v8, %s3235_s1  ;;  %v534_v11 = vmul.f32 0.5, %v3149_v8 }
 0x447   :  { %v441_v12 = vadd.f32 0.5, %v440_v10 }
 0x448   :  { %v535_v14 = vadd.f32 0.5, %v534_v11 }
 0x449   :  { %v442_v22 = vmul.f32 0.0, %v441_v12 }
 0x44a   :  { %v539_v23 = vmul.f32 %v537_v21, %v535_v14 }
 0x4b7   :  { %v445_v15 = vpop.permute.xlu0 %444 }
 0x4b8   :  { %v542_v18 = vpop.permute.xlu1 %541  ;;  %v447_v19 = vmul.f32 %v445_v15, %v441_v12 }
 0x4b9   :  { %v544_v20 = vmul.f32 %v542_v18, %v535_v14 }
 0x4ba   :  { %449 = vrot.lane.b32.xlu0 %v447_v19, %s3236_s2 }
 0x4bb   :  { %546 = vrot.lane.b32.xlu1 %v544_v20, %s3236_s2 }
 0x52c   :  { %v450_v24 = vpop.permute.xlu0 %449 }
 0x52d   :  { %v547_v25 = vpop.permute.xlu1 %546  ;;  %v452_v26 = vadd.f32 %v450_v24, %v442_v22 }
 0x52e   :  { %v3457_v27 = vadd.f32 %v547_v25, %v539_v23 }
 0x52f   :  { %3150 = vtanh.f32 %v452_v26 }
 0x530   :  { %3152 = vtanh.f32 %v3457_v27  ;;  %v806_v3 = vrot.slane %v3457_v27, 6 }
 0x539   :  { %v3151_v28 = vpop.eup %3150 }
 0x53a   :  { %v3153_v29 = vpop.eup %3152  ;;  %455 = vrot.lane.b32.xlu0 %v3151_v28, %s3235_s1 }
 0x53b   :  { %552 = vrot.lane.b32.xlu1 %v3153_v29, %s3235_s1 }
 0x5ac   :  { %v456_v30 = vpop.permute.xlu0 %455 }
 0x5ad   :  { %v553_v31 = vpop.permute.xlu1 %552  ;;  %v458_v33 = vmul.f32 %v456_v30, %v441_v12 }
 0x5ae   :  { %v555_v35 = vmul.f32 %v553_v31, %v535_v14 }
 0x5af   :  { %557 = vrot.lane.b32.xlu0 %v458_v33, %s3236_s2 }
 0x5b0   :  { %v632_v36 = vrot.slane %v555_v35, 2 }
 0x5b2   :  { %633 = vrot.lane.b32.xlu1 %v632_v36, %s3236_s2 }
 0x621   :  { %v558_v37 = vpop.permute.xlu0 %557 }
 0x622   :  { %2737 = vmatmul.mubr.msk.f32.vlgmr.msra.gmra.mrb[4].mxu1 %vm98_vm1, %v558_v37 }
 0x623   :  { %3016 = vmatpush3.bf16.msra.mxu1 %v3335_v9  ;;  %2758 = vmatprep.mubr.msk.f32.mxu1 %vm3233_vm0, %v3234_v17 }
 0x624   :  { %v634_v38 = vpop.permute.xlu1 %633  ;;  %3017 = vmatprep.subr.bf16.mxu1 %v3232_v13 }
 0x625   :  { %2748 = vmatmul.mubr.msk.f32.vlgmr.msra.gmra.mrb[6].mxu0 %vm98_vm1, %v634_v38 }
 0x626   :  { %3022 = vmatpush3.bf16.msra.mxu0 %v3391_v47  ;;  %2769 = vmatprep.mubr.msk.f32.mxu0 %vm3233_vm0, %v3234_v17 }
 0x627   :  { %3019 = vmatpush3.bf16.msra.mxu1 %v3352_v16  ;;  %3023 = vmatprep.subr.bf16.mxu0 %v3232_v13 }
 0x628   :  { %3026 = vmatprep.subr.bf16.mxu1 %v3232_v13 }
 0x62a   :  { %2759 = vmatmul.mubr.msk.f32.vlgmr.msra.gmra.mrb[6].mxu1 %vm98_vm1, %v634_v38  ;;  %3025 = vmatpush3.bf16.msra.mxu0 %v3411_v54 }
 0x62b   :  { %3032 = vmatprep.subr.bf16.mxu0 %v3232_v13  ;;  %3028 = vmatpush3.bf16.msra.mxu1 %v3402_v51 }
 0x62c   :  { %3029 = vmatprep.subr.bf16.mxu1 %v3232_v13  ;;  %2780 = vmatprep.mubr.msk.f32.mxu1 %vm3233_vm0, %v3234_v17 }
 0x62f   :  { %3031 = vmatpush3.bf16.msra.mxu1 %v3415_v55 }
 0x630   :  { %3038 = vmatprep.subr.bf16.mxu1 %v3232_v13 }
 0x6f5   :  { %v627_v39 = vpop.f32.mrb[4].mxu1 }
 0x6f6   :  { %v2738_v40 = vpop.f32.mrb[5].mxu1 }
 0x6f8   :  { %v703_v41 = vpop.f32.mrb[6].mxu0 }
 0x6f9   :  { %v704_v42 = vadd.f32 %v703_v41, %v627_v39  ;;  %v2749_v43 = vpop.f32.mrb[7].mxu0 }
 0x6fb   :  { %v707_v44 = vadd.f32 %v3448_v62, %v704_v42 }
 0x6fd   :  { %3154 = vtanh.f32 %v707_v44  ;;  %v794_v45 = vpop.f32.mrb[6].mxu1 }
 0x6fe   :  { %v799_v46 = vrot.slane %v794_v45, 4  ;;  %v2760_v48 = vpop.f32.mrb[7].mxu1 }
 0x700   :  { %v801_v49 = vadd.f32 %v799_v46, %v3374_v34 }
 0x702   :  { %3156 = vtanh.f32 %v801_v49 }
 0x707   :  { %v3155_v50 = vpop.eup %3154 }
 0x708   :  { %713 = vrot.lane.b32.xlu0 %v3155_v50, %s3235_s1  ;;  %v709_v53 = vmul.f32 0.5, %v3155_v50 }
 0x70a   :  { %v710_v56 = vadd.f32 0.5, %v709_v53 }
 0x70c   :  { %v3157_v52 = vpop.eup %3156  ;;  %v711_v0 = vmul.f32 %v710_v56, %v452_v26 }
 0x70d   :  { %810 = vrot.lane.b32.xlu1 %v3157_v52, %s3235_s1  ;;  %v803_v58 = vmul.f32 0.5, %v3157_v52 }
 0x70f   :  { %v804_v60 = vadd.f32 0.5, %v803_v58 }
 0x711   :  { %v808_v4 = vmul.f32 %v806_v3, %v804_v60 }
 0x77a   :  { %v714_v57 = vpop.permute.xlu0 %713 }
 0x77b   :  { %v716_v59 = vmul.f32 %v714_v57, %v710_v56 }
 0x77d   :  { %718 = vrot.lane.b32.xlu0 %v716_v59, %s3236_s2 }
 0x77f   :  { %v811_v61 = vpop.permute.xlu1 %810 }
 0x780   :  { %v813_v63 = vmul.f32 %v811_v61, %v804_v60 }
 0x782   :  { %815 = vrot.lane.b32.xlu1 %v813_v63, %s3236_s2 }
 0x7ef   :  { %v719_v1 = vpop.permute.xlu0 %718 }
 0x7f0   :  { %v3491_v2 = vadd.f32 %v719_v1, %v711_v0 }
 0x7f2   :  { %3158 = vtanh.f32 %v3491_v2 }
 0x7f4   :  { %v816_v5 = vpop.permute.xlu1 %815 }
 0x7f5   :  { %v818_v6 = vadd.f32 %v816_v5, %v808_v4 }
 0x7f7   :  { %3160 = vtanh.f32 %v818_v6 }
 0x7fc   :  { %v3159_v7 = vpop.eup %3158 }
 0x7fd   :  { %724 = vrot.lane.b32.xlu0 %v3159_v7, %s3235_s1 }
 0x801   :  { %v3161_v8 = vpop.eup %3160 }
 0x802   :  { %821 = vrot.lane.b32.xlu1 %v3161_v8, %s3235_s1 }
 0x86f   :  { %v725_v10 = vpop.permute.xlu0 %724 }
 0x870   :  { %v727_v11 = vmul.f32 %v725_v10, %v710_v56 }
 0x872   :  { %826 = vrot.lane.b32.xlu0 %v727_v11, %s3236_s2 }
 0x874   :  { %v822_v12 = vpop.permute.xlu1 %821 }
 0x875   :  { %v824_v14 = vmul.f32 %v822_v12, %v804_v60 }
 0x877   :  { %v901_v15 = vrot.slane %v824_v14, 4 }
 0x879   :  { %902 = vrot.lane.b32.xlu1 %v901_v15, %s3236_s2 }
 0x8e4   :  { %v827_v18 = vpop.permute.xlu0 %826 }
 0x8e5   :  { %2770 = vmatmul.mubr.msk.f32.vlgmr.msra.gmra.mrb[8].mxu0 %vm98_vm1, %v827_v18 }
 0x8e6   :  { %3034 = vmatpush3.bf16.msra.mxu0 %v3335_v9  ;;  %2791 = vmatprep.mubr.msk.f32.mxu0 %vm3233_vm0, %v3234_v17 }
 0x8e7   :  { %3035 = vmatprep.subr.bf16.mxu0 %v3232_v13 }
 0x8ea   :  { %3037 = vmatpush3.bf16.msra.mxu0 %v3352_v16 }
 0x8eb   :  { %v903_v19 = vpop.permute.xlu1 %902  ;;  %3044 = vmatprep.subr.bf16.mxu0 %v3232_v13 }
 0x8ec   :  { %2781 = vmatmul.mubr.msk.f32.vlgmr.msra.gmra.mrb[8].mxu1 %vm98_vm1, %v903_v19 }
 0x8ed   :  { %2792 = vmatmul.mubr.msk.f32.vlgmr.msra.gmra.mrb[10].mxu0 %vm98_vm1, %v903_v19  ;;  %3040 = vmatpush3.bf16.msra.mxu1 %v3391_v47 }
 0x8ee   :  { %3041 = vmatprep.subr.bf16.mxu1 %v3232_v13  ;;  %3046 = vmatpush3.bf16.msra.mxu0 %v3402_v51 }
 0x8ef   :  { %3047 = vmatprep.subr.bf16.mxu0 %v3232_v13  ;;  %2802 = vmatprep.mubr.msk.f32.mxu1 %vm3233_vm0, %v3234_v17 }
 0x8f0   :  { %2813 = vmatprep.mubr.msk.f32.mxu0 %vm3233_vm0, %v3234_v17 }
 0x8f1   :  { %3043 = vmatpush3.bf16.msra.mxu1 %v3411_v54 }
 0x8f2   :  { %3049 = vmatpush3.bf16.msra.mxu0 %v3415_v55  ;;  %3050 = vmatprep.subr.bf16.mxu1 %v3232_v13 }
 0x8f3   :  { %3056 = vmatprep.subr.bf16.mxu0 %v3232_v13 }
 0x9b8   :  { %v896_v20 = vpop.f32.mrb[8].mxu0 }
 0x9b9   :  { %v2771_v21 = vpop.f32.mrb[9].mxu0 }
 0x9bf   :  { %v972_v22 = vpop.f32.mrb[8].mxu1 }
 0x9c0   :  { %v973_v23 = vadd.f32 %v972_v22, %v896_v20  ;;  %v1063_v24 = vpop.f32.mrb[10].mxu0  ;;  %v2782_v25 = vpop.f32.mrb[9].mxu1 }
 0x9c1   :  { %v1068_v26 = vrot.slane %v1063_v24, 2  ;;  %v2793_v27 = vpop.f32.mrb[11].mxu0 }
 0x9c2   :  { %v976_v28 = vadd.f32 %v3448_v62, %v973_v23 }
 0x9c3   :  { %v1070_v29 = vadd.f32 %v1068_v26, %v3374_v34  ;;  %v1075_v34 = vrot.slane %v818_v6, 6 }
 0x9c4   :  { %3162 = vtanh.f32 %v976_v28 }
 0x9c5   :  { %3164 = vtanh.f32 %v1070_v29 }
 0x9ce   :  { %v3163_v30 = vpop.eup %3162 }
 0x9cf   :  { %v3165_v31 = vpop.eup %3164  ;;  %982 = vrot.lane.b32.xlu1 %v3163_v30, %s3235_s1  ;;  %v978_v33 = vmul.f32 0.5, %v3163_v30 }
 0x9d0   :  { %1079 = vrot.lane.b32.xlu0 %v3165_v31, %s3235_s1  ;;  %v1072_v35 = vmul.f32 0.5, %v3165_v31 }
 0x9d1   :  { %v979_v36 = vadd.f32 0.5, %v978_v33 }
 0x9d2   :  { %v1073_v37 = vadd.f32 0.5, %v1072_v35 }
 0x9d3   :  { %v980_v42 = vmul.f32 %v979_v36, %v3491_v2 }
 0x9d4   :  { %v1077_v43 = vmul.f32 %v1075_v34, %v1073_v37 }
 0xa41   :  { %v983_v38 = vpop.permute.xlu1 %982 }
 0xa42   :  { %v1080_v39 = vpop.permute.xlu0 %1079  ;;  %v985_v40 = vmul.f32 %v983_v38, %v979_v36 }
 0xa43   :  { %v1082_v41 = vmul.f32 %v1080_v39, %v1073_v37 }
 0xa44   :  { %987 = vrot.lane.b32.xlu1 %v985_v40, %s3236_s2 }
 0xa45   :  { %1084 = vrot.lane.b32.xlu0 %v1082_v41, %s3236_s2 }
 0xab6   :  { %v988_v44 = vpop.permute.xlu1 %987 }
 0xab7   :  { %v1085_v45 = vpop.permute.xlu0 %1084  ;;  %v990_v46 = vadd.f32 %v988_v44, %v980_v42 }
 0xab8   :  { %v3527_v48 = vadd.f32 %v1085_v45, %v1077_v43 }
 0xab9   :  { %3166 = vtanh.f32 %v990_v46 }
 0xaba   :  { %3168 = vtanh.f32 %v3527_v48  ;;  %v1341_v22 = vrot.slane %v3527_v48, 6 }
 0xac3   :  { %v3167_v49 = vpop.eup %3166 }
 0xac4   :  { %v3169_v50 = vpop.eup %3168  ;;  %993 = vrot.lane.b32.xlu1 %v3167_v49, %s3235_s1 }
 0xac5   :  { %1090 = vrot.lane.b32.xlu0 %v3169_v50, %s3235_s1 }
 0xb36   :  { %v994_v52 = vpop.permute.xlu1 %993 }
 0xb37   :  { %v1091_v53 = vpop.permute.xlu0 %1090  ;;  %v996_v56 = vmul.f32 %v994_v52, %v979_v36 }
 0xb38   :  { %v1093_v57 = vmul.f32 %v1091_v53, %v1073_v37 }
 0xb39   :  { %1095 = vrot.lane.b32.xlu0 %v996_v56, %s3236_s2 }
 0xb3a   :  { %v1170_v58 = vrot.slane %v1093_v57, 6 }
 0xb3c   :  { %1171 = vrot.lane.b32.xlu1 %v1170_v58, %s3236_s2 }
 0xbab   :  { %v1096_v59 = vpop.permute.xlu0 %1095 }
 0xbac   :  { %2803 = vmatmul.mubr.msk.f32.vlgmr.msra.gmra.mrb[10].mxu1 %vm98_vm1, %v1096_v59 }
 0xbad   :  { %3052 = vmatpush3.bf16.msra.mxu1 %v3335_v9  ;;  %2824 = vmatprep.mubr.msk.f32.mxu1 %vm3233_vm0, %v3234_v17 }
 0xbae   :  { %v1172_v60 = vpop.permute.xlu1 %1171  ;;  %3053 = vmatprep.subr.bf16.mxu1 %v3232_v13 }
 0xbaf   :  { %2814 = vmatmul.mubr.msk.f32.vlgmr.msra.gmra.mrb[12].mxu0 %vm98_vm1, %v1172_v60 }
 0xbb0   :  { %3058 = vmatpush3.bf16.msra.mxu0 %v3391_v47  ;;  %2835 = vmatprep.mubr.msk.f32.mxu0 %vm3233_vm0, %v3234_v17 }
 0xbb1   :  { %3055 = vmatpush3.bf16.msra.mxu1 %v3352_v16  ;;  %3059 = vmatprep.subr.bf16.mxu0 %v3232_v13 }
 0xbb2   :  { %3062 = vmatprep.subr.bf16.mxu1 %v3232_v13 }
 0xbb4   :  { %2825 = vmatmul.mubr.msk.f32.vlgmr.msra.gmra.mrb[12].mxu1 %vm98_vm1, %v1172_v60  ;;  %3061 = vmatpush3.bf16.msra.mxu0 %v3411_v54 }
 0xbb5   :  { %3064 = vmatpush3.bf16.msra.mxu1 %v3402_v51  ;;  %3068 = vmatprep.subr.bf16.mxu0 %v3232_v13 }
 0xbb6   :  { %3065 = vmatprep.subr.bf16.mxu1 %v3232_v13  ;;  %2846 = vmatprep.mubr.msk.f32.mxu1 %vm3233_vm0, %v3234_v17 }
 0xbb9   :  { %3067 = vmatpush3.bf16.msra.mxu1 %v3415_v55 }
 0xbba   :  { %3074 = vmatprep.subr.bf16.mxu1 %v3232_v13 }
 0xc7f   :  { %v1165_v61 = vpop.f32.mrb[10].mxu1 }
 0xc80   :  { %v2804_v63 = vpop.f32.mrb[11].mxu1 }
 0xc82   :  { %v1241_v0 = vpop.f32.mrb[12].mxu0 }
 0xc83   :  { %v1242_v1 = vadd.f32 %v1241_v0, %v1165_v61  ;;  %v2815_v2 = vpop.f32.mrb[13].mxu0 }
 0xc85   :  { %v1245_v3 = vadd.f32 %v3448_v62, %v1242_v1 }
 0xc87   :  { %3170 = vtanh.f32 %v1245_v3  ;;  %v1332_v4 = vpop.f32.mrb[12].mxu1 }
 0xc88   :  { %v1336_v5 = vadd.f32 %v1332_v4, %v3372_v32  ;;  %v2826_v6 = vpop.f32.mrb[13].mxu1 }
 0xc8a   :  { %3172 = vtanh.f32 %v1336_v5 }
 0xc91   :  { %v3171_v7 = vpop.eup %3170 }
 0xc92   :  { %1251 = vrot.lane.b32.xlu0 %v3171_v7, %s3235_s1  ;;  %v1247_v10 = vmul.f32 0.5, %v3171_v7 }
 0xc94   :  { %v3173_v8 = vpop.eup %3172  ;;  %v1248_v12 = vadd.f32 0.5, %v1247_v10 }
 0xc95   :  { %1345 = vrot.lane.b32.xlu1 %v3173_v8, %s3235_s1  ;;  %v1338_v11 = vmul.f32 0.5, %v3173_v8 }
 0xc96   :  { %v1249_v21 = vmul.f32 %v1248_v12, %v990_v46 }
 0xc97   :  { %v1339_v18 = vadd.f32 0.5, %v1338_v11 }
 0xc99   :  { %v1343_v25 = vmul.f32 %v1341_v22, %v1339_v18 }
 0xd04   :  { %v1252_v14 = vpop.permute.xlu0 %1251 }
 0xd05   :  { %v1254_v15 = vmul.f32 %v1252_v14, %v1248_v12 }
 0xd07   :  { %1256 = vrot.lane.b32.xlu0 %v1254_v15, %s3236_s2  ;;  %v1346_v19 = vpop.permute.xlu1 %1345 }
 0xd08   :  { %v1348_v20 = vmul.f32 %v1346_v19, %v1339_v18 }
 0xd0a   :  { %1350 = vrot.lane.b32.xlu1 %v1348_v20, %s3236_s2 }
 0xd79   :  { %v1257_v23 = vpop.permute.xlu0 %1256 }
 0xd7a   :  { %v1259_v24 = vadd.f32 %v1257_v23, %v1249_v21 }
 0xd7c   :  { %3174 = vtanh.f32 %v1259_v24  ;;  %v1351_v26 = vpop.permute.xlu1 %1350 }
 0xd7d   :  { %v3562_v27 = vadd.f32 %v1351_v26, %v1343_v25 }
 0xd7f   :  { %3176 = vtanh.f32 %v3562_v27  ;;  %v1609_v1 = vrot.slane %v3562_v27, 6 }
 0xd86   :  { %v3175_v28 = vpop.eup %3174 }
 0xd87   :  { %1262 = vrot.lane.b32.xlu0 %v3175_v28, %s3235_s1 }
 0xd89   :  { %v3177_v29 = vpop.eup %3176 }
 0xd8a   :  { %1356 = vrot.lane.b32.xlu1 %v3177_v29, %s3235_s1 }
 0xdf9   :  { %v1263_v30 = vpop.permute.xlu0 %1262 }
 0xdfa   :  { %v1265_v31 = vmul.f32 %v1263_v30, %v1248_v12 }
 0xdfc   :  { %1361 = vrot.lane.b32.xlu0 %v1265_v31, %s3236_s2  ;;  %v1357_v33 = vpop.permute.xlu1 %1356 }
 0xdfd   :  { %v1359_v35 = vmul.f32 %v1357_v33, %v1339_v18 }
 0xdff   :  { %1436 = vrot.lane.b32.xlu1 %v1359_v35, %s3236_s2 }
 0xe6e   :  { %v1362_v36 = vpop.permute.xlu0 %1361 }
 0xe6f   :  { %2836 = vmatmul.mubr.msk.f32.vlgmr.msra.gmra.mrb[14].mxu0 %vm98_vm1, %v1362_v36 }
 0xe70   :  { %3070 = vmatpush3.bf16.msra.mxu0 %v3335_v9  ;;  %2857 = vmatprep.mubr.msk.f32.mxu0 %vm3233_vm0, %v3234_v17 }
 0xe71   :  { %v1437_v37 = vpop.permute.xlu1 %1436  ;;  %3071 = vmatprep.subr.bf16.mxu0 %v3232_v13 }
 0xe72   :  { %2847 = vmatmul.mubr.msk.f32.vlgmr.msra.gmra.mrb[14].mxu1 %vm98_vm1, %v1437_v37 }
 0xe73   :  { %3076 = vmatpush3.bf16.msra.mxu1 %v3391_v47  ;;  %2868 = vmatprep.mubr.msk.f32.mxu1 %vm3233_vm0, %v3234_v17 }
 0xe74   :  { %3073 = vmatpush3.bf16.msra.mxu0 %v3352_v16  ;;  %3077 = vmatprep.subr.bf16.mxu1 %v3232_v13 }
 0xe75   :  { %3080 = vmatprep.subr.bf16.mxu0 %v3232_v13 }
 0xe77   :  { %2858 = vmatmul.mubr.msk.f32.vlgmr.msra.gmra.mrb[16].mxu0 %vm98_vm1, %v1437_v37  ;;  %3079 = vmatpush3.bf16.msra.mxu1 %v3411_v54 }
 0xe78   :  { %3082 = vmatpush3.bf16.msra.mxu0 %v3402_v51  ;;  %3086 = vmatprep.subr.bf16.mxu1 %v3232_v13 }
 0xe79   :  { %3083 = vmatprep.subr.bf16.mxu0 %v3232_v13  ;;  %2879 = vmatprep.mubr.msk.f32.mxu0 %vm3233_vm0, %v3234_v17 }
 0xe7c   :  { %3085 = vmatpush3.bf16.msra.mxu0 %v3415_v55 }
 0xe7d   :  { %3092 = vmatprep.subr.bf16.mxu0 %v3232_v13 }
 0xf42   :  { %v1431_v38 = vpop.f32.mrb[14].mxu0 }
 0xf43   :  { %v2837_v39 = vpop.f32.mrb[15].mxu0 }
 0xf45   :  { %v1506_v40 = vpop.f32.mrb[14].mxu1 }
 0xf46   :  { %v1507_v41 = vadd.f32 %v1506_v40, %v1431_v38  ;;  %v2848_v34 = vpop.f32.mrb[15].mxu1 }
 0xf48   :  { %v1510_v42 = vadd.f32 %v3448_v62, %v1507_v41 }
 0xf4a   :  { %3178 = vtanh.f32 %v1510_v42  ;;  %v1597_v43 = vpop.f32.mrb[16].mxu0 }
 0xf4b   :  { %v1602_v44 = vrot.slane %v1597_v43, 6  ;;  %v2859_v45 = vpop.f32.mrb[17].mxu0 }
 0xf4d   :  { %v1604_v46 = vadd.f32 %v1602_v44, %v3372_v32 }
 0xf4f   :  { %3180 = vtanh.f32 %v1604_v46 }
 0xf54   :  { %v3179_v48 = vpop.eup %3178 }
 0xf55   :  { %1516 = vrot.lane.b32.xlu0 %v3179_v48, %s3235_s1  ;;  %v1512_v50 = vmul.f32 0.5, %v3179_v48 }
 0xf57   :  { %v1513_v52 = vadd.f32 0.5, %v1512_v50 }
 0xf59   :  { %v3181_v49 = vpop.eup %3180  ;;  %v1514_v61 = vmul.f32 %v1513_v52, %v1259_v24 }
 0xf5a   :  { %1613 = vrot.lane.b32.xlu1 %v3181_v49, %s3235_s1  ;;  %v1606_v56 = vmul.f32 0.5, %v3181_v49 }
 0xf5c   :  { %v1607_v58 = vadd.f32 0.5, %v1606_v56 }
 0xf5e   :  { %v1611_v2 = vmul.f32 %v1609_v1, %v1607_v58 }
 0xfc7   :  { %v1517_v53 = vpop.permute.xlu0 %1516 }
 0xfc8   :  { %v1519_v57 = vmul.f32 %v1517_v53, %v1513_v52 }
 0xfca   :  { %1521 = vrot.lane.b32.xlu0 %v1519_v57, %s3236_s2 }
 0xfcc   :  { %v1614_v59 = vpop.permute.xlu1 %1613 }
 0xfcd   :  { %v1616_v60 = vmul.f32 %v1614_v59, %v1607_v58 }
 0xfcf   :  { %1618 = vrot.lane.b32.xlu1 %v1616_v60, %s3236_s2 }
0x103c   :  { %v1522_v63 = vpop.permute.xlu0 %1521 }
0x103d   :  { %v3596_v0 = vadd.f32 %v1522_v63, %v1514_v61 }
0x103f   :  { %3182 = vtanh.f32 %v3596_v0 }
0x1041   :  { %v1619_v3 = vpop.permute.xlu1 %1618 }
0x1042   :  { %v3600_v4 = vadd.f32 %v1619_v3, %v1611_v2 }
0x1044   :  { %3184 = vtanh.f32 %v3600_v4  ;;  %v1878_v40 = vrot.slane %v3600_v4, 6 }
0x1049   :  { %v3183_v5 = vpop.eup %3182 }
0x104a   :  { %1527 = vrot.lane.b32.xlu0 %v3183_v5, %s3235_s1 }
0x104e   :  { %v3185_v6 = vpop.eup %3184 }
0x104f   :  { %1624 = vrot.lane.b32.xlu1 %v3185_v6, %s3235_s1 }
0x10bc   :  { %v1528_v7 = vpop.permute.xlu0 %1527 }
0x10bd   :  { %v1530_v8 = vmul.f32 %v1528_v7, %v1513_v52 }
0x10bf   :  { %1629 = vrot.lane.b32.xlu0 %v1530_v8, %s3236_s2 }
0x10c1   :  { %v1625_v10 = vpop.permute.xlu1 %1624 }
0x10c2   :  { %v1627_v11 = vmul.f32 %v1625_v10, %v1607_v58 }
0x10c4   :  { %v1704_v12 = vrot.slane %v1627_v11, 2 }
0x10c6   :  { %1705 = vrot.lane.b32.xlu1 %v1704_v12, %s3236_s2 }
0x1131   :  { %v1630_v14 = vpop.permute.xlu0 %1629 }
0x1132   :  { %2869 = vmatmul.mubr.msk.f32.vlgmr.msra.gmra.mrb[16].mxu1 %vm98_vm1, %v1630_v14 }
0x1133   :  { %3088 = vmatpush3.bf16.msra.mxu1 %v3335_v9  ;;  %2890 = vmatprep.mubr.msk.f32.mxu1 %vm3233_vm0, %v3234_v17 }
0x1134   :  { %3089 = vmatprep.subr.bf16.mxu1 %v3232_v13 }
0x1137   :  { %3091 = vmatpush3.bf16.msra.mxu1 %v3352_v16 }
0x1138   :  { %v1706_v15 = vpop.permute.xlu1 %1705  ;;  %3098 = vmatprep.subr.bf16.mxu1 %v3232_v13 }
0x1139   :  { %2880 = vmatmul.mubr.msk.f32.vlgmr.msra.gmra.mrb[18].mxu0 %vm98_vm1, %v1706_v15 }
0x113a   :  { %2891 = vmatmul.mubr.msk.f32.vlgmr.msra.gmra.mrb[18].mxu1 %vm98_vm1, %v1706_v15  ;;  %3094 = vmatpush3.bf16.msra.mxu0 %v3391_v47 }
0x113b   :  { %3095 = vmatprep.subr.bf16.mxu0 %v3232_v13  ;;  %3100 = vmatpush3.bf16.msra.mxu1 %v3402_v51 }
0x113c   :  { %2901 = vmatprep.mubr.msk.f32.mxu0 %vm3233_vm0, %v3234_v17  ;;  %3101 = vmatprep.subr.bf16.mxu1 %v3232_v13 }
0x113d   :  { %2912 = vmatprep.mubr.msk.f32.mxu1 %vm3233_vm0, %v3234_v17 }
0x113e   :  { %3097 = vmatpush3.bf16.msra.mxu0 %v3411_v54 }
0x113f   :  { %3104 = vmatprep.subr.bf16.mxu0 %v3232_v13  ;;  %3103 = vmatpush3.bf16.msra.mxu1 %v3415_v55 }
0x1140   :  { %3110 = vmatprep.subr.bf16.mxu1 %v3232_v13 }
0x1205   :  { %v1699_v18 = vpop.f32.mrb[16].mxu1 }
0x1206   :  { %v2870_v19 = vpop.f32.mrb[17].mxu1 }
0x120c   :  { %v1775_v20 = vpop.f32.mrb[18].mxu0 }
0x120d   :  { %v1776_v21 = vadd.f32 %v1775_v20, %v1699_v18  ;;  %v2881_v22 = vpop.f32.mrb[19].mxu0  ;;  %v1866_v23 = vpop.f32.mrb[18].mxu1 }
0x120e   :  { %v1871_v24 = vrot.slane %v1866_v23, 4  ;;  %v2892_v25 = vpop.f32.mrb[19].mxu1 }
0x120f   :  { %v1779_v26 = vadd.f32 %v3448_v62, %v1776_v21 }
0x1210   :  { %v1873_v27 = vadd.f32 %v1871_v24, %v3372_v32 }
0x1211   :  { %3186 = vtanh.f32 %v1779_v26 }
0x1212   :  { %3188 = vtanh.f32 %v1873_v27 }
0x121b   :  { %v3187_v28 = vpop.eup %3186 }
0x121c   :  { %v3189_v29 = vpop.eup %3188  ;;  %1785 = vrot.lane.b32.xlu0 %v3187_v28, %s3235_s1  ;;  %v1781_v30 = vmul.f32 0.5, %v3187_v28  ;;  %v2338_v28 = vld [vmem:[%s3726_s9] sm:$0xff] }
0x121d   :  { %1882 = vrot.lane.b32.xlu1 %v3189_v29, %s3235_s1  ;;  %v1875_v31 = vmul.f32 0.5, %v3189_v29  ;;  %v2339_v29 = vld [vmem:[%s3726_s9 + $0x8] sm:$0xff] }
0x121e   :  { %v1782_v33 = vadd.f32 0.5, %v1781_v30  ;;  %v3129_v30 = vpack.c.bf16 %v2339_v29, %v2338_v28 }
0x121f   :  { %v1876_v36 = vadd.f32 0.5, %v1875_v31  ;;  %v2340_v31 = vld [vmem:[%s3726_s9 + $0x10] sm:$0xff] }
0x1220   :  { %v1783_v41 = vmul.f32 %v1782_v33, %v3596_v0 }
0x1221   :  { %v1880_v42 = vmul.f32 %v1878_v40, %v1876_v36 }
0x128e   :  { %v1786_v35 = vpop.permute.xlu0 %1785 }
0x128f   :  { %v1788_v37 = vmul.f32 %v1786_v35, %v1782_v33  ;;  %v1883_v38 = vpop.permute.xlu1 %1882 }
0x1290   :  { %v1885_v39 = vmul.f32 %v1883_v38, %v1876_v36 }
0x1291   :  { %1790 = vrot.lane.b32.xlu0 %v1788_v37, %s3236_s2 }
0x1292   :  { %1887 = vrot.lane.b32.xlu1 %v1885_v39, %s3236_s2 }
0x1303   :  { %v1791_v34 = vpop.permute.xlu0 %1790 }
0x1304   :  { %v1793_v43 = vadd.f32 %v1791_v34, %v1783_v41  ;;  %v1888_v44 = vpop.permute.xlu1 %1887 }
0x1305   :  { %v3636_v45 = vadd.f32 %v1888_v44, %v1880_v42 }
0x1306   :  { %3190 = vtanh.f32 %v1793_v43 }
0x1307   :  { %3192 = vtanh.f32 %v3636_v45  ;;  %v2147_v14 = vrot.slane %v3636_v45, 6 }
0x1310   :  { %v3191_v46 = vpop.eup %3190 }
0x1311   :  { %v3193_v48 = vpop.eup %3192  ;;  %1796 = vrot.lane.b32.xlu0 %v3191_v46, %s3235_s1 }
0x1312   :  { %1893 = vrot.lane.b32.xlu1 %v3193_v48, %s3235_s1 }
0x1383   :  { %v1797_v49 = vpop.permute.xlu0 %1796 }
0x1384   :  { %v1799_v50 = vmul.f32 %v1797_v49, %v1782_v33  ;;  %v1894_v52 = vpop.permute.xlu1 %1893  ;;  %v2341_v33 = vld [vmem:[%s3726_s9 + $0x18] sm:$0xff] }
0x1385   :  { %v1896_v53 = vmul.f32 %v1894_v52, %v1876_v36  ;;  %v3132_v36 = vpack.c.bf16 %v2341_v33, %v2340_v31 }
0x1386   :  { %1898 = vrot.lane.b32.xlu0 %v1799_v50, %s3236_s2 }
0x1387   :  { %v1973_v56 = vrot.slane %v1896_v53, 4  ;;  %v2343_v53 = vld [vmem:[%s3727_s10 + $0x8] sm:$0xff] }
0x1389   :  { %1974 = vrot.lane.b32.xlu1 %v1973_v56, %s3236_s2  ;;  %v2344_v56 = vld [vmem:[%s3727_s10 + $0x10] sm:$0xff] }
0x13f8   :  { %v1899_v57 = vpop.permute.xlu0 %1898 }
0x13f9   :  { %2902 = vmatmul.mubr.msk.f32.vlgmr.msra.gmra.mrb[20].mxu0 %vm98_vm1, %v1899_v57 }
0x13fa   :  { %3106 = vmatpush3.bf16.msra.mxu0 %v3335_v9  ;;  %2923 = vmatprep.mubr.msk.f32.mxu0 %vm3233_vm0, %v3234_v17 }
0x13fb   :  { %v1975_v58 = vpop.permute.xlu1 %1974  ;;  %3107 = vmatprep.subr.bf16.mxu0 %v3232_v13 }
0x13fc   :  { %2913 = vmatmul.mubr.msk.f32.vlgmr.msra.gmra.mrb[20].mxu1 %vm98_vm1, %v1975_v58 }
0x13fd   :  { %3112 = vmatpush3.bf16.msra.mxu1 %v3391_v47  ;;  %2934 = vmatprep.mubr.msk.f32.mxu1 %vm3233_vm0, %v3234_v17 }
0x13fe   :  { %3109 = vmatpush3.bf16.msra.mxu0 %v3352_v16  ;;  %3113 = vmatprep.subr.bf16.mxu1 %v3232_v13 }
0x13ff   :  { %3116 = vmatprep.subr.bf16.mxu0 %v3232_v13 }
0x1401   :  { %2924 = vmatmul.mubr.msk.f32.vlgmr.msra.gmra.mrb[22].mxu0 %vm98_vm1, %v1975_v58  ;;  %3115 = vmatpush3.bf16.msra.mxu1 %v3411_v54  ;;  %v2345_v58 = vld [vmem:[%s3727_s10 + $0x18] sm:$0xff] }
0x1402   :  { %3118 = vmatpush3.bf16.msra.mxu0 %v3402_v51  ;;  %2945 = vmatprep.mubr.msk.f32.mxu0 %vm3233_vm0, %v3234_v17 }
0x1403   :  { %3119 = vmatprep.subr.bf16.mxu0 %v3232_v13  ;;  %3122 = vmatprep.subr.bf16.mxu1 %v3232_v13 }
0x1406   :  { %3121 = vmatpush3.bf16.msra.mxu0 %v3415_v55 }
0x1407   :  { %3128 = vmatprep.subr.bf16.mxu0 %v3232_v13 }
0x14cc   :  { %v1968_v9 = vpop.f32.mrb[20].mxu0 }
0x14cd   :  { %v2903_v16 = vpop.f32.mrb[21].mxu0 }
0x14cf   :  { %v2044_v47 = vpop.f32.mrb[20].mxu1 }
0x14d0   :  { %v2045_v59 = vadd.f32 %v2044_v47, %v1968_v9  ;;  %v2914_v60 = vpop.f32.mrb[21].mxu1  ;;  %v3126_v9 = vpack.c.bf16 %v2345_v58, %v2344_v56 }
0x14d2   :  { %v2048_v54 = vadd.f32 %v3448_v62, %v2045_v59 }
0x14d4   :  { %3194 = vtanh.f32 %v2048_v54  ;;  %v2135_v51 = vpop.f32.mrb[22].mxu0 }
0x14d5   :  { %v2140_v61 = vrot.slane %v2135_v51, 2  ;;  %v2925_v63 = vpop.f32.mrb[23].mxu0  ;;  %v2536_v51 = vld [vmem:[#allocation2] ss:$0 sm:$0xff] }
0x14d7   :  { %v2142_v0 = vadd.f32 %v2140_v61, %v3372_v32 }
0x14d9   :  { %3196 = vtanh.f32 %v2142_v0 }
0x14de   :  { %v3195_v1 = vpop.eup %3194 }
0x14df   :  { %2054 = vrot.lane.b32.xlu1 %v3195_v1, %s3235_s1  ;;  %v2050_v2 = vmul.f32 0.5, %v3195_v1 }
0x14e1   :  { %v2051_v3 = vadd.f32 0.5, %v2050_v2 }
0x14e3   :  { %v3197_v55 = vpop.eup %3196  ;;  %v2052_v32 = vmul.f32 %v2051_v3, %v1793_v43 }
0x14e4   :  { %2151 = vrot.lane.b32.xlu0 %v3197_v55, %s3235_s1  ;;  %v2144_v5 = vmul.f32 0.5, %v3197_v55 }
0x14e6   :  { %v2145_v7 = vadd.f32 0.5, %v2144_v5 }
0x14e8   :  { %v2149_v15 = vmul.f32 %v2147_v14, %v2145_v7 }
0x1551   :  { %v2055_v4 = vpop.permute.xlu1 %2054 }
0x1552   :  { %v2057_v6 = vmul.f32 %v2055_v4, %v2051_v3 }
0x1554   :  { %2059 = vrot.lane.b32.xlu1 %v2057_v6, %s3236_s2 }
0x1556   :  { %v2152_v8 = vpop.permute.xlu0 %2151 }
0x1557   :  { %v2154_v10 = vmul.f32 %v2152_v8, %v2145_v7 }
0x1559   :  { %2156 = vrot.lane.b32.xlu0 %v2154_v10, %s3236_s2 }
0x15c6   :  { %v2060_v11 = vpop.permute.xlu1 %2059 }
0x15c7   :  { %v2062_v12 = vadd.f32 %v2060_v11, %v2052_v32 }
0x15c9   :  { %3198 = vtanh.f32 %v2062_v12 }
0x15cb   :  { %v2157_v18 = vpop.permute.xlu0 %2156 }
0x15cc   :  { %v2159_v19 = vadd.f32 %v2157_v18, %v2149_v15 }
0x15ce   :  { %3200 = vtanh.f32 %v2159_v19 }
0x15d3   :  { %v3199_v20 = vpop.eup %3198 }
0x15d4   :  { %2065 = vrot.lane.b32.xlu1 %v3199_v20, %s3235_s1 }
0x15d8   :  { %v3201_v21 = vpop.eup %3200 }
0x15d9   :  { %2162 = vrot.lane.b32.xlu0 %v3201_v21, %s3235_s1 }
0x1646   :  { %v2066_v22 = vpop.permute.xlu1 %2065 }
0x1647   :  { %v2068_v23 = vmul.f32 %v2066_v22, %v2051_v3 }
0x1649   :  { %2167 = vrot.lane.b32.xlu0 %v2068_v23, %s3236_s2 }
0x164b   :  { %v2163_v24 = vpop.permute.xlu0 %2162 }
0x164c   :  { %v2165_v25 = vmul.f32 %v2163_v24, %v2145_v7 }
0x164e   :  { %v2242_v26 = vrot.slane %v2165_v25, 6 }
0x1650   :  { %2243 = vrot.lane.b32.xlu1 %v2242_v26, %s3236_s2 }
0x16bb   :  { %v2168_v27 = vpop.permute.xlu0 %2167 }
0x16bc   :  { %2935 = vmatmul.mubr.msk.f32.vlgmr.msra.gmra.mrb[22].mxu1 %vm98_vm1, %v2168_v27 }
0x16bd   :  { %2956 = vmatprep.mubr.msk.f32.mxu1 %vm3233_vm0, %v3234_v17 }
0x16c2   :  { %v2244_v35 = vpop.permute.xlu1 %2243 }
0x16c3   :  { %2946 = vmatmul.mubr.msk.f32.vlgmr.msra.gmra.mrb[24].mxu0 %vm98_vm1, %v2244_v35 }
0x16c4   :  { %3130 = vmatpush3.bf16.msra.mxu0 %v3129_v30  ;;  %2967 = vmatprep.mubr.msk.f32.mxu0 %vm3233_vm0, %v3234_v17 }
0x16c5   :  { %3131 = vmatprep.subr.bf16.mxu0 %v3232_v13 }
0x16c8   :  { %3133 = vmatpush3.bf16.msra.mxu0 %v3132_v36 }
0x16cb   :  { %2968 = vmatmul.mubr.msk.f32.vlgmr.msra.gmra.mrb[26].mxu0 %vm98_vm1, %v2244_v35 }
0x178f   :  { %v2237_v37 = vpop.f32.mrb[22].mxu1 }
0x1790   :  { %v2936_v38 = vpop.f32.mrb[23].mxu1 }
0x1796   :  { %v2313_v39 = vpop.f32.mrb[24].mxu0 }
0x1797   :  { %v2314_v40 = vadd.f32 %v2313_v39, %v2237_v37  ;;  %v2947_v41 = vpop.f32.mrb[25].mxu0 }
0x1799   :  { %v2317_v34 = vadd.f32 %v3448_v62, %v2314_v40  ;;  %v2342_v62 = vld [vmem:[%s3727_s10] sm:$0xff] }
0x179a   :  { %v3123_v57 = vpack.c.bf16 %v2343_v53, %v2342_v62 }
0x179b   :  { %3202 = vtanh.f32 %v2317_v34 }
0x179c   :  { %3124 = vmatpush3.bf16.msra.mxu1 %v3123_v57 }
0x179d   :  { %3125 = vmatprep.subr.bf16.mxu1 %v3232_v13 }
0x179e   :  { %v2487_v42 = vpop.f32.mrb[26].mxu0 }
0x179f   :  { %v2969_v43 = vpop.f32.mrb[27].mxu0 }
0x17a0   :  { %3127 = vmatpush3.bf16.msra.mxu1 %v3126_v9 }
0x17a5   :  { %v3203_v44 = vpop.eup %3202 }
0x17a6   :  { %2323 = vrot.lane.b32.xlu0 %v3203_v44, %s3235_s1  ;;  %v2319_v45 = vmul.f32 0.5, %v3203_v44 }
0x17a8   :  { %v2320_v17 = vadd.f32 0.5, %v2319_v45 }
0x17aa   :  { %v2321_v49 = vmul.f32 %v2320_v17, %v2062_v12 }
0x1818   :  { %v2324_v46 = vpop.permute.xlu0 %2323 }
0x1819   :  { %v2326_v48 = vmul.f32 %v2324_v46, %v2320_v17 }
0x181b   :  { %2328 = vrot.lane.b32.xlu1 %v2326_v48, %s3236_s2 }
0x188d   :  { %v2329_v50 = vpop.permute.xlu1 %2328 }
0x188e   :  { %v2331_v52 = vadd.f32 %v2329_v50, %v2321_v49 }
0x1890   :  { %3204 = vtanh.f32 %v2331_v52 }
0x189a   :  { %v3205_v16 = vpop.eup %3204 }
0x189b   :  { %2334 = vrot.lane.b32.xlu0 %v3205_v16, %s3235_s1 }
0x190d   :  { %v2335_v47 = vpop.permute.xlu0 %2334 }
0x190e   :  { %v2337_v59 = vmul.f32 %v2335_v47, %v2320_v17 }
0x1910   :  { %2347 = vrot.lane.b32.xlu1 %v2337_v59, %s3236_s2 }
0x1982   :  { %v2348_v60 = vpop.permute.xlu1 %2347 }
0x1983   :  { %2957 = vmatmul.mubr.msk.f32.vlgmr.msra.gmra.mrb[24].mxu1 %vm98_vm1, %v2348_v60 }
0x1a56   :  { %v2417_v54 = vpop.f32.mrb[24].mxu1 }
0x1a57   :  { %v2488_v61 = vadd.f32 %v2487_v42, %v2417_v54  ;;  %v2958_v63 = vpop.f32.mrb[25].mxu1 }
0x1a59   :  { %v2498_v0 = vadd.f32 %v2536_v51, %v2488_v61 }
0x1a5b   :  { %2500 = vst.msk [vmem:[%s3729_s12] sm:$0x3] %vm2499_vm2, %v2498_v0 }
0x1a5c   :  { %2505 = vsyncpa [#allocation4], 1 }

</bundles_post_ra>
